<compile_context>
chip_gen: v6e
topology: v6e:2x2x1
jax: 0.10.0
libtpu: 0.0.40
codegen_flags: <defaults>
</compile_context>

<pallas_src>
import functools

import jax
import jax.numpy as jnp
from jax.experimental import pallas as pl
from jax.experimental.pallas import tpu as pltpu


# --------------------------------------------------------------------------- #
# Kernel
# --------------------------------------------------------------------------- #
def vae_kernel(
    x_ref, eps_ref,
    w1_ref, b1_ref,
    wms_ref, bms_ref,
    w3_ref, b3_ref,
    w4_ref, b4_ref,
    logits_ref, musig_ref,
    *, latent_dim, act_dtype,
):
    L = latent_dim
    f32 = jnp.float32
    bf16 = jnp.bfloat16

    # ---- encode: h1 = tanh(x @ W1 + b1) ----
    x = x_ref[...].astype(bf16)                                   # bf16 MXU operand
    pre1 = jnp.dot(x, w1_ref[...], preferred_element_type=f32) + b1_ref[...]
    h1 = jnp.tanh(pre1.astype(act_dtype))                         # f32 (v5e) / bf16 (v6e+)

    # ---- fused mu || logvar head: one lane-dense [TB, 2L] matmul ----
    musig = (
        jnp.dot(h1.astype(bf16), wms_ref[...], preferred_element_type=f32)
        + bms_ref[...]
    )                                                             # [TB, 2L] f32
    musig_ref[...] = musig.astype(musig_ref.dtype)                # lane-dense store

    mu = musig[:, :L]
    logvar = musig[:, L:]                                         # "sigma" in the module

    # ---- reparameterize: z = mu + eps * exp(0.5 * logvar) ----
    std = jnp.exp((0.5 * logvar).astype(act_dtype)).astype(f32)
    z = mu + eps_ref[...] * std                                   # [TB, L] f32

    # ---- decode: logits = fc4(tanh(fc3(z))) ----
    pre3 = jnp.dot(z.astype(bf16), w3_ref[...], preferred_element_type=f32) + b3_ref[...]
    h3 = jnp.tanh(pre3.astype(act_dtype))                         # [TB, H]
    logits = (
        jnp.dot(h3.astype(bf16), w4_ref[...], preferred_element_type=f32)
        + b4_ref[...]
    )                                                             # [TB, N] f32 acc
    logits_ref[...] = logits.astype(logits_ref.dtype)             # bf16 writeback


# --------------------------------------------------------------------------- #
# Wrapper helpers
# --------------------------------------------------------------------------- #
def _pick_tb(batch):
    """Batch tile: 128 by default; 256 (v6e/v7x MXU height) only when the grid
    still gives >=2 steps per TensorCore (>=4 total for v7x's two cores)."""
    return 256 if batch >= 4 * 256 else 128


def _default_act_dtype():
    """bf16 transcendentals on bf16-capable EUPs (v6e/v7x); f32 elsewhere (v5e)."""
    try:
        kind = jax.devices()[0].device_kind.lower()
    except Exception:  # pragma: no cover - backend not initialised
        return jnp.float32
    if "v6" in kind or "v7" in kind:
        return jnp.bfloat16
    return jnp.float32


def _resident_spec(shape, single_buffer):
    """Constant index_map -> tile fetched once and kept resident across the grid.
    Buffered(1) avoids allocating a useless second buffer for weights."""
    index_map = lambda i: (0, 0)
    if single_buffer:
        return pl.BlockSpec(shape, index_map, pipeline_mode=pl.Buffered(1))
    return pl.BlockSpec(shape, index_map)


def _vmem_budget_bytes(tb, N, H, L, logits_itemsize):
    """Derive the VMEM request from actual buffer sizes (with 2x headroom)."""
    f32, bf16 = 4, 2
    # double-buffered activation streams (in + out)
    stream = 2 * (tb * N * f32 + tb * L * f32 + tb * N * logits_itemsize + tb * 2 * L * f32)
    # resident bf16 weights (single-buffered) + f32 biases padded to 8 sublanes
    weights = (N * H + H * 2 * L + L * H + H * N) * bf16
    biases = 8 * (H + 2 * L + H + N) * f32
    est = stream + weights + biases
    return int(min(max(2 * est, 8 * 1024 * 1024), 64 * 1024 * 1024))


def prepare_params(params):
    """One-time weight prep (hoisted out of the forward path):
    fuse hid_mu || hid_sigma into one [H, 2L] projection and cast weights to bf16."""
    bf16 = jnp.bfloat16
    wms = jnp.concatenate([params["wmu"], params["wsig"]], axis=1).astype(bf16)  # [H, 2L]
    bms = jnp.concatenate([params["bmu"], params["bsig"]], axis=1)               # [1, 2L] f32
    return dict(
        w1=params["w1"].astype(bf16), b1=params["b1"],
        wms=wms, bms=bms,
        w3=params["w3"].astype(bf16), b3=params["b3"],
        w4=params["w4"].astype(bf16), b4=params["b4"],
    )


# --------------------------------------------------------------------------- #
# Forward
# --------------------------------------------------------------------------- #
def vae_forward(x, eps, prepared, *, tb=None, logits_dtype=jnp.bfloat16, act_dtype=None):
    """VAE forward with a fused Pallas kernel.

    x:        [B, num_items] f32
    eps:      [B, latent_dim] f32 standard-normal noise (reparameterization trick)
    prepared: output of prepare_params() (bf16 weights, fused mu/sigma head)
    Returns (logits, mu, sigma) like the PyTorch module (logits in `logits_dtype`).
    """
    B, N = x.shape
    H = prepared["w1"].shape[1]
    L = prepared["wms"].shape[1] // 2

    if tb is None:
        tb = _pick_tb(B)
    if act_dtype is None:
        act_dtype = _default_act_dtype()

    # No jnp.pad pre-pass: the final ragged batch tile (if any) is handled by
    # Pallas partial-block masking; every op is row-independent so padded rows
    # never contaminate valid rows.
    grid = (pl.cdiv(B, tb),)

    batched = lambda shape: pl.BlockSpec(shape, lambda i: (i, 0))
    kernel = functools.partial(vae_kernel, latent_dim=L, act_dtype=act_dtype)
    vmem_bytes = _vmem_budget_bytes(tb, N, H, L, jnp.dtype(logits_dtype).itemsize)

    def _call(single_buffer_weights):
        resident = lambda shape: _resident_spec(shape, single_buffer_weights)
        grid_spec = pltpu.PrefetchScalarGridSpec(
            num_scalar_prefetch=0,
            grid=grid,
            in_specs=[
                batched((tb, N)),                               # x
                batched((tb, L)),                               # eps
                resident((N, H)), resident((1, H)),             # fc1
                resident((H, 2 * L)), resident((1, 2 * L)),     # fused hid_mu || hid_sigma
                resident((L, H)), resident((1, H)),             # fc3
                resident((H, N)), resident((1, N)),             # fc4
            ],
            out_specs=[
                batched((tb, N)),                               # logits (bf16, lane-dense)
                batched((tb, 2 * L)),                           # mu || logvar (lane-dense)
            ],
        )
        return pl.pallas_call(
            kernel,
            out_shape=(
                jax.ShapeDtypeStruct((B, N), logits_dtype),
                jax.ShapeDtypeStruct((B, 2 * L), jnp.float32),
            ),
            grid_spec=grid_spec,
            compiler_params=pltpu.CompilerParams(
                dimension_semantics=("parallel",),      # batch axis shards across TCs
                vmem_limit_bytes=vmem_bytes,            # derived, not a blanket 48 MiB
            ),
        )(
            x, eps,
            prepared["w1"], prepared["b1"],
            prepared["wms"], prepared["bms"],
            prepared["w3"], prepared["b3"],
            prepared["w4"], prepared["b4"],
        )

    try:
        logits, musig = _call(single_buffer_weights=True)
    except Exception:
        # Fallback if this jax build rejects pipeline_mode=pl.Buffered(1);
        # default double-buffered weights are still correct, just use more VMEM.
        logits, musig = _call(single_buffer_weights=False)

    return logits, musig[:, :L], musig[:, L:]


# --------------------------------------------------------------------------- #
# Init + pure-JAX reference
# --------------------------------------------------------------------------- #
def init_params(key, num_items, hidden_dim, latent_dim):
    """Deterministic init. Weights stored [in, out], biases [1, out] (f32)."""
    ks = jax.random.split(key, 10)

    def lin(kw, kb, fan_in, fan_out):
        # PyTorch nn.Linear default: U(-1/sqrt(fan_in), 1/sqrt(fan_in))
        bound = 1.0 / jnp.sqrt(fan_in)
        w = jax.random.uniform(kw, (fan_in, fan_out), jnp.float32, -bound, bound)
        b = jax.random.uniform(kb, (1, fan_out), jnp.float32, -bound, bound)
        return w, b

    w1, b1 = lin(ks[0], ks[1], num_items, hidden_dim)
    wmu, bmu = lin(ks[2], ks[3], hidden_dim, latent_dim)
    wsig, bsig = lin(ks[4], ks[5], hidden_dim, latent_dim)
    w3, b3 = lin(ks[6], ks[7], latent_dim, hidden_dim)
    w4, b4 = lin(ks[8], ks[9], hidden_dim, num_items)
    return dict(w1=w1, b1=b1, wmu=wmu, bmu=bmu, wsig=wsig, bsig=bsig,
                w3=w3, b3=b3, w4=w4, b4=b4)


def vae_forward_ref(x, eps, p, *, matmul_dtype=jnp.float32, act_dtype=jnp.float32,
                    logits_dtype=jnp.float32):
    """Pure-JAX reference. With bf16 matmul/act dtypes it mirrors the kernel."""
    mm = lambda a, b: jnp.dot(a.astype(matmul_dtype), b.astype(matmul_dtype),
                              preferred_element_type=jnp.float32)
    h1 = jnp.tanh((mm(x, p["w1"]) + p["b1"]).astype(act_dtype)).astype(jnp.float32)
    mu = mm(h1, p["wmu"]) + p["bmu"]
    sigma = mm(h1, p["wsig"]) + p["bsig"]
    std = jnp.exp((0.5 * sigma).astype(act_dtype)).astype(jnp.float32)
    z = mu + eps * std
    h3 = jnp.tanh((mm(z, p["w3"]) + p["b3"]).astype(act_dtype)).astype(jnp.float32)
    logits = (mm(h3, p["w4"]) + p["b4"]).astype(logits_dtype)
    return logits, mu, sigma


# --------------------------------------------------------------------------- #
# Demo / self-check
# --------------------------------------------------------------------------- #
if __name__ == "__main__":
    # Small shapes consistent with the module; batch sized so grid=(2,) with tb=128.
    B, NUM_ITEMS, HIDDEN, LATENT = 256, 256, 128, 64

    key = jax.random.PRNGKey(0)
    k_param, k_x, k_eps = jax.random.split(key, 3)

    params = init_params(k_param, NUM_ITEMS, HIDDEN, LATENT)
    x = jax.random.normal(k_x, (B, NUM_ITEMS), jnp.float32)
    eps = jax.random.normal(k_eps, (B, LATENT), jnp.float32)   # torch.randn_like(std)

    prepared = prepare_params(params)        # one-time: fuse heads + bf16 casts
    act_dt = _default_act_dtype()

    logits, mu, sigma = jax.block_until_ready(
        vae_forward(x, eps, prepared, tb=128)
    )
    logits = logits.astype(jnp.float32)

    # Tight check against a reference mirroring the kernel's bf16 casts.
    lr, mr, sr = vae_forward_ref(x, eps, params, matmul_dtype=jnp.bfloat16,
                                 act_dtype=act_dt, logits_dtype=jnp.bfloat16)
    assert jnp.allclose(logits, lr.astype(jnp.float32), atol=2e-2, rtol=2e-2)
    assert jnp.allclose(mu, mr, atol=2e-2, rtol=2e-2)
    assert jnp.allclose(sigma, sr, atol=2e-2, rtol=2e-2)

    # Coarse check against the pure-f32 semantics of the PyTorch module.
    lr32, mr32, sr32 = vae_forward_ref(x, eps, params, matmul_dtype=jnp.float32)
    assert jnp.allclose(logits, lr32, atol=8e-2, rtol=8e-2)
    assert jnp.allclose(mu, mr32, atol=8e-2, rtol=8e-2)
    assert jnp.allclose(sigma, sr32, atol=8e-2, rtol=8e-2)

    print("KERNEL_OK")
</pallas_src>

<mosaic_0001>
module attributes {stable_mosaic.version = 11 : i64} {
  func.func @vae_kernel(%arg0: i32, %arg1: memref<128x256xf32, #tpu.memory_space<vmem>>, %arg2: memref<128x64xf32, #tpu.memory_space<vmem>>, %arg3: memref<256x128xbf16, #tpu.memory_space<vmem>>, %arg4: memref<1x128xf32, #tpu.memory_space<vmem>>, %arg5: memref<128x128xbf16, #tpu.memory_space<vmem>>, %arg6: memref<1x128xf32, #tpu.memory_space<vmem>>, %arg7: memref<64x128xbf16, #tpu.memory_space<vmem>>, %arg8: memref<1x128xf32, #tpu.memory_space<vmem>>, %arg9: memref<128x256xbf16, #tpu.memory_space<vmem>>, %arg10: memref<1x256xf32, #tpu.memory_space<vmem>>, %arg11: memref<128x256xbf16, #tpu.memory_space<vmem>>, %arg12: memref<128x128xf32, #tpu.memory_space<vmem>>) attributes {dimension_semantics = [#tpu.dimension_semantics<parallel>], iteration_bounds = array<i64: 2>, scalar_prefetch = 0 : i64, scratch_operands = 0 : i64, tpu.core_type = #tpu.core_type<tc>, window_params = [{transform_indices = @transform_0, window_bounds = array<i64: 128, 256>}, {transform_indices = @transform_1, window_bounds = array<i64: 128, 64>}, {pipeline_mode = #tpu.pipeline_mode<synchronous>, transform_indices = @transform_2, window_bounds = array<i64: 256, 128>}, {pipeline_mode = #tpu.pipeline_mode<synchronous>, transform_indices = @transform_3, window_bounds = array<i64: 1, 128>}, {pipeline_mode = #tpu.pipeline_mode<synchronous>, transform_indices = @transform_4, window_bounds = array<i64: 128, 128>}, {pipeline_mode = #tpu.pipeline_mode<synchronous>, transform_indices = @transform_5, window_bounds = array<i64: 1, 128>}, {pipeline_mode = #tpu.pipeline_mode<synchronous>, transform_indices = @transform_6, window_bounds = array<i64: 64, 128>}, {pipeline_mode = #tpu.pipeline_mode<synchronous>, transform_indices = @transform_7, window_bounds = array<i64: 1, 128>}, {pipeline_mode = #tpu.pipeline_mode<synchronous>, transform_indices = @transform_8, window_bounds = array<i64: 128, 256>}, {pipeline_mode = #tpu.pipeline_mode<synchronous>, transform_indices = @transform_9, window_bounds = array<i64: 1, 256>}, {transform_indices = @transform_10, window_bounds = array<i64: 128, 256>}, {transform_indices = @transform_11, window_bounds = array<i64: 128, 128>}]} {
    %c0 = arith.constant 0 : index
    %c0_0 = arith.constant 0 : index
    %0 = vector.load %arg1[%c0, %c0_0] : memref<128x256xf32, #tpu.memory_space<vmem>>, vector<128x256xf32>
    %1 = arith.truncf %0 : vector<128x256xf32> to vector<128x256xbf16>
    %c0_1 = arith.constant 0 : index
    %c0_2 = arith.constant 0 : index
    %2 = vector.load %arg3[%c0_1, %c0_2] : memref<256x128xbf16, #tpu.memory_space<vmem>>, vector<256x128xbf16>
    %cst = arith.constant dense<0.000000e+00> : vector<128x128xf32>
    %3 = tpu.matmul %1, %2, %cst {dimension_numbers = #tpu.dot_dimension_numbers<[1], [0], [0], [1], [0, 0, 1, 1], [], []>} : vector<128x256xbf16>, vector<256x128xbf16>, vector<128x128xf32> -> vector<128x128xf32>
    %c0_3 = arith.constant 0 : index
    %c0_4 = arith.constant 0 : index
    %4 = vector.load %arg4[%c0_3, %c0_4] : memref<1x128xf32, #tpu.memory_space<vmem>>, vector<1x128xf32>
    %5 = vector.broadcast %4 : vector<1x128xf32> to vector<128x128xf32>
    %6 = arith.addf %3, %5 : vector<128x128xf32>
    %7 = math.tanh %6 : vector<128x128xf32>
    %8 = arith.truncf %7 : vector<128x128xf32> to vector<128x128xbf16>
    %c0_5 = arith.constant 0 : index
    %c0_6 = arith.constant 0 : index
    %9 = vector.load %arg5[%c0_5, %c0_6] : memref<128x128xbf16, #tpu.memory_space<vmem>>, vector<128x128xbf16>
    %cst_7 = arith.constant dense<0.000000e+00> : vector<128x128xf32>
    %10 = tpu.matmul %8, %9, %cst_7 {dimension_numbers = #tpu.dot_dimension_numbers<[1], [0], [0], [1], [0, 0, 1, 1], [], []>} : vector<128x128xbf16>, vector<128x128xbf16>, vector<128x128xf32> -> vector<128x128xf32>
    %c0_8 = arith.constant 0 : index
    %c0_9 = arith.constant 0 : index
    %11 = vector.load %arg6[%c0_8, %c0_9] : memref<1x128xf32, #tpu.memory_space<vmem>>, vector<1x128xf32>
    %12 = vector.broadcast %11 : vector<1x128xf32> to vector<128x128xf32>
    %13 = arith.addf %10, %12 : vector<128x128xf32>
    %c0_10 = arith.constant 0 : index
    %c0_11 = arith.constant 0 : index
    %14 = vector.load %arg12[%c0_10, %c0_11] : memref<128x128xf32, #tpu.memory_space<vmem>>, vector<128x128xf32>
    tpu.vector_store %arg12[%c0_10, %c0_11], %13 {strides = array<i32>} : memref<128x128xf32, #tpu.memory_space<vmem>>, vector<128x128xf32>,
    %15 = vector.extract_strided_slice %13 {offsets = [0, 0], sizes = [128, 64], strides = [1, 1]} : vector<128x128xf32> to vector<128x64xf32>
    %16 = vector.extract_strided_slice %13 {offsets = [0, 64], sizes = [128, 64], strides = [1, 1]} : vector<128x128xf32> to vector<128x64xf32>
    %cst_12 = arith.constant 5.000000e-01 : f32
    %17 = vector.broadcast %cst_12 : f32 to vector<128x64xf32>
    %18 = arith.mulf %17, %16 : vector<128x64xf32>
    %19 = math.exp %18 : vector<128x64xf32>
    %c0_13 = arith.constant 0 : index
    %c0_14 = arith.constant 0 : index
    %20 = vector.load %arg2[%c0_13, %c0_14] : memref<128x64xf32, #tpu.memory_space<vmem>>, vector<128x64xf32>
    %21 = arith.mulf %20, %19 : vector<128x64xf32>
    %22 = arith.addf %15, %21 : vector<128x64xf32>
    %23 = arith.truncf %22 : vector<128x64xf32> to vector<128x64xbf16>
    %c0_15 = arith.constant 0 : index
    %c0_16 = arith.constant 0 : index
    %24 = vector.load %arg7[%c0_15, %c0_16] : memref<64x128xbf16, #tpu.memory_space<vmem>>, vector<64x128xbf16>
    %cst_17 = arith.constant dense<0.000000e+00> : vector<128x128xf32>
    %25 = tpu.matmul %23, %24, %cst_17 {dimension_numbers = #tpu.dot_dimension_numbers<[1], [0], [0], [1], [0, 0, 1, 1], [], []>} : vector<128x64xbf16>, vector<64x128xbf16>, vector<128x128xf32> -> vector<128x128xf32>
    %c0_18 = arith.constant 0 : index
    %c0_19 = arith.constant 0 : index
    %26 = vector.load %arg8[%c0_18, %c0_19] : memref<1x128xf32, #tpu.memory_space<vmem>>, vector<1x128xf32>
    %27 = vector.broadcast %26 : vector<1x128xf32> to vector<128x128xf32>
    %28 = arith.addf %25, %27 : vector<128x128xf32>
    %29 = math.tanh %28 : vector<128x128xf32>
    %30 = arith.truncf %29 : vector<128x128xf32> to vector<128x128xbf16>
    %c0_20 = arith.constant 0 : index
    %c0_21 = arith.constant 0 : index
    %31 = vector.load %arg9[%c0_20, %c0_21] : memref<128x256xbf16, #tpu.memory_space<vmem>>, vector<128x256xbf16>
    %cst_22 = arith.constant dense<0.000000e+00> : vector<128x256xf32>
    %32 = tpu.matmul %30, %31, %cst_22 {dimension_numbers = #tpu.dot_dimension_numbers<[1], [0], [0], [1], [0, 0, 1, 1], [], []>} : vector<128x128xbf16>, vector<128x256xbf16>, vector<128x256xf32> -> vector<128x256xf32>
    %c0_23 = arith.constant 0 : index
    %c0_24 = arith.constant 0 : index
    %33 = vector.load %arg10[%c0_23, %c0_24] : memref<1x256xf32, #tpu.memory_space<vmem>>, vector<1x256xf32>
    %34 = vector.broadcast %33 : vector<1x256xf32> to vector<128x256xf32>
    %35 = arith.addf %32, %34 : vector<128x256xf32>
    %36 = arith.truncf %35 : vector<128x256xf32> to vector<128x256xbf16>
    %c0_25 = arith.constant 0 : index
    %c0_26 = arith.constant 0 : index
    %37 = vector.load %arg11[%c0_25, %c0_26] : memref<128x256xbf16, #tpu.memory_space<vmem>>, vector<128x256xbf16>
    tpu.vector_store %arg11[%c0_25, %c0_26], %36 {strides = array<i32>} : memref<128x256xbf16, #tpu.memory_space<vmem>>, vector<128x256xbf16>,
    return
  }
  func.func @transform_0(%arg0: i32) -> (i32, i32) {
    %c0_i32 = arith.constant 0 : i32
    %c0_i32_0 = arith.constant 0 : i32
    return %arg0, %c0_i32 : i32, i32
  }
  func.func @transform_1(%arg0: i32) -> (i32, i32) {
    %c0_i32 = arith.constant 0 : i32
    %c0_i32_0 = arith.constant 0 : i32
    return %arg0, %c0_i32 : i32, i32
  }
  func.func @transform_2(%arg0: i32) -> (i32, i32) {
    %c0_i32 = arith.constant 0 : i32
    %c0_i32_0 = arith.constant 0 : i32
    %c0_i32_1 = arith.constant 0 : i32
    return %c0_i32, %c0_i32_0 : i32, i32
  }
  func.func @transform_3(%arg0: i32) -> (i32, i32) {
    %c0_i32 = arith.constant 0 : i32
    %c0_i32_0 = arith.constant 0 : i32
    %c0_i32_1 = arith.constant 0 : i32
    return %c0_i32, %c0_i32_0 : i32, i32
  }
  func.func @transform_4(%arg0: i32) -> (i32, i32) {
    %c0_i32 = arith.constant 0 : i32
    %c0_i32_0 = arith.constant 0 : i32
    %c0_i32_1 = arith.constant 0 : i32
    return %c0_i32, %c0_i32_0 : i32, i32
  }
  func.func @transform_5(%arg0: i32) -> (i32, i32) {
    %c0_i32 = arith.constant 0 : i32
    %c0_i32_0 = arith.constant 0 : i32
    %c0_i32_1 = arith.constant 0 : i32
    return %c0_i32, %c0_i32_0 : i32, i32
  }
  func.func @transform_6(%arg0: i32) -> (i32, i32) {
    %c0_i32 = arith.constant 0 : i32
    %c0_i32_0 = arith.constant 0 : i32
    %c0_i32_1 = arith.constant 0 : i32
    return %c0_i32, %c0_i32_0 : i32, i32
  }
  func.func @transform_7(%arg0: i32) -> (i32, i32) {
    %c0_i32 = arith.constant 0 : i32
    %c0_i32_0 = arith.constant 0 : i32
    %c0_i32_1 = arith.constant 0 : i32
    return %c0_i32, %c0_i32_0 : i32, i32
  }
  func.func @transform_8(%arg0: i32) -> (i32, i32) {
    %c0_i32 = arith.constant 0 : i32
    %c0_i32_0 = arith.constant 0 : i32
    %c0_i32_1 = arith.constant 0 : i32
    return %c0_i32, %c0_i32_0 : i32, i32
  }
  func.func @transform_9(%arg0: i32) -> (i32, i32) {
    %c0_i32 = arith.constant 0 : i32
    %c0_i32_0 = arith.constant 0 : i32
    %c0_i32_1 = arith.constant 0 : i32
    return %c0_i32, %c0_i32_0 : i32, i32
  }
  func.func @transform_10(%arg0: i32) -> (i32, i32) {
    %c0_i32 = arith.constant 0 : i32
    %c0_i32_0 = arith.constant 0 : i32
    return %arg0, %c0_i32 : i32, i32
  }
  func.func @transform_11(%arg0: i32) -> (i32, i32) {
    %c0_i32 = arith.constant 0 : i32
    %c0_i32_0 = arith.constant 0 : i32
    return %arg0, %c0_i32 : i32, i32
  }
}

module attributes {stable_mosaic.version = 11 : i64} {
  func.func @vae_kernel(%arg0: i32, %arg1: memref<128x256xf32, #tpu.memory_space<vmem>>, %arg2: memref<128x64xf32, #tpu.memory_space<vmem>>, %arg3: memref<256x128xbf16, #tpu.memory_space<vmem>>, %arg4: memref<1x128xf32, #tpu.memory_space<vmem>>, %arg5: memref<128x128xbf16, #tpu.memory_space<vmem>>, %arg6: memref<1x128xf32, #tpu.memory_space<vmem>>, %arg7: memref<64x128xbf16, #tpu.memory_space<vmem>>, %arg8: memref<1x128xf32, #tpu.memory_space<vmem>>, %arg9: memref<128x256xbf16, #tpu.memory_space<vmem>>, %arg10: memref<1x256xf32, #tpu.memory_space<vmem>>, %arg11: memref<128x256xbf16, #tpu.memory_space<vmem>>, %arg12: memref<128x128xf32, #tpu.memory_space<vmem>>) attributes {dimension_semantics = [#tpu.dimension_semantics<parallel>], iteration_bounds = array<i64: 2>, scalar_prefetch = 0 : i64, scratch_operands = 0 : i64, tpu.core_type = #tpu.core_type<tc>, window_params = [{transform_indices = @transform_0, window_bounds = array<i64: 128, 256>}, {transform_indices = @transform_1, window_bounds = array<i64: 128, 64>}, {pipeline_mode = #tpu.pipeline_mode<synchronous>, transform_indices = @transform_2, window_bounds = array<i64: 256, 128>}, {pipeline_mode = #tpu.pipeline_mode<synchronous>, transform_indices = @transform_3, window_bounds = array<i64: 1, 128>}, {pipeline_mode = #tpu.pipeline_mode<synchronous>, transform_indices = @transform_4, window_bounds = array<i64: 128, 128>}, {pipeline_mode = #tpu.pipeline_mode<synchronous>, transform_indices = @transform_5, window_bounds = array<i64: 1, 128>}, {pipeline_mode = #tpu.pipeline_mode<synchronous>, transform_indices = @transform_6, window_bounds = array<i64: 64, 128>}, {pipeline_mode = #tpu.pipeline_mode<synchronous>, transform_indices = @transform_7, window_bounds = array<i64: 1, 128>}, {pipeline_mode = #tpu.pipeline_mode<synchronous>, transform_indices = @transform_8, window_bounds = array<i64: 128, 256>}, {pipeline_mode = #tpu.pipeline_mode<synchronous>, transform_indices = @transform_9, window_bounds = array<i64: 1, 256>}, {transform_indices = @transform_10, window_bounds = array<i64: 128, 256>}, {transform_indices = @transform_11, window_bounds = array<i64: 128, 128>}]} {
    %c0 = arith.constant 0 : index
    %c0_0 = arith.constant 0 : index
    %0 = vector.load %arg1[%c0, %c0_0] : memref<128x256xf32, #tpu.memory_space<vmem>>, vector<128x256xf32>
    %1 = arith.truncf %0 : vector<128x256xf32> to vector<128x256xbf16>
    %c0_1 = arith.constant 0 : index
    %c0_2 = arith.constant 0 : index
    %2 = vector.load %arg3[%c0_1, %c0_2] : memref<256x128xbf16, #tpu.memory_space<vmem>>, vector<256x128xbf16>
    %cst = arith.constant dense<0.000000e+00> : vector<128x128xf32>
    %3 = tpu.matmul %1, %2, %cst {dimension_numbers = #tpu.dot_dimension_numbers<[1], [0], [0], [1], [0, 0, 1, 1], [], []>} : vector<128x256xbf16>, vector<256x128xbf16>, vector<128x128xf32> -> vector<128x128xf32>
    %c0_3 = arith.constant 0 : index
    %c0_4 = arith.constant 0 : index
    %4 = vector.load %arg4[%c0_3, %c0_4] : memref<1x128xf32, #tpu.memory_space<vmem>>, vector<1x128xf32>
    %5 = vector.broadcast %4 : vector<1x128xf32> to vector<128x128xf32>
    %6 = arith.addf %3, %5 : vector<128x128xf32>
    %7 = math.tanh %6 : vector<128x128xf32>
    %8 = arith.truncf %7 : vector<128x128xf32> to vector<128x128xbf16>
    %c0_5 = arith.constant 0 : index
    %c0_6 = arith.constant 0 : index
    %9 = vector.load %arg5[%c0_5, %c0_6] : memref<128x128xbf16, #tpu.memory_space<vmem>>, vector<128x128xbf16>
    %cst_7 = arith.constant dense<0.000000e+00> : vector<128x128xf32>
    %10 = tpu.matmul %8, %9, %cst_7 {dimension_numbers = #tpu.dot_dimension_numbers<[1], [0], [0], [1], [0, 0, 1, 1], [], []>} : vector<128x128xbf16>, vector<128x128xbf16>, vector<128x128xf32> -> vector<128x128xf32>
    %c0_8 = arith.constant 0 : index
    %c0_9 = arith.constant 0 : index
    %11 = vector.load %arg6[%c0_8, %c0_9] : memref<1x128xf32, #tpu.memory_space<vmem>>, vector<1x128xf32>
    %12 = vector.broadcast %11 : vector<1x128xf32> to vector<128x128xf32>
    %13 = arith.addf %10, %12 : vector<128x128xf32>
    %c0_10 = arith.constant 0 : index
    %c0_11 = arith.constant 0 : index
    %14 = vector.load %arg12[%c0_10, %c0_11] : memref<128x128xf32, #tpu.memory_space<vmem>>, vector<128x128xf32>
    tpu.vector_store %arg12[%c0_10, %c0_11], %13 {strides = array<i32>} : memref<128x128xf32, #tpu.memory_space<vmem>>, vector<128x128xf32>,
    %15 = vector.extract_strided_slice %13 {offsets = [0, 0], sizes = [128, 64], strides = [1, 1]} : vector<128x128xf32> to vector<128x64xf32>
    %16 = vector.extract_strided_slice %13 {offsets = [0, 64], sizes = [128, 64], strides = [1, 1]} : vector<128x128xf32> to vector<128x64xf32>
    %cst_12 = arith.constant 5.000000e-01 : f32
    %17 = vector.broadcast %cst_12 : f32 to vector<128x64xf32>
    %18 = arith.mulf %17, %16 : vector<128x64xf32>
    %19 = math.exp %18 : vector<128x64xf32>
    %c0_13 = arith.constant 0 : index
    %c0_14 = arith.constant 0 : index
    %20 = vector.load %arg2[%c0_13, %c0_14] : memref<128x64xf32, #tpu.memory_space<vmem>>, vector<128x64xf32>
    %21 = arith.mulf %20, %19 : vector<128x64xf32>
    %22 = arith.addf %15, %21 : vector<128x64xf32>
    %23 = arith.truncf %22 : vector<128x64xf32> to vector<128x64xbf16>
    %c0_15 = arith.constant 0 : index
    %c0_16 = arith.constant 0 : index
    %24 = vector.load %arg7[%c0_15, %c0_16] : memref<64x128xbf16, #tpu.memory_space<vmem>>, vector<64x128xbf16>
    %cst_17 = arith.constant dense<0.000000e+00> : vector<128x128xf32>
    %25 = tpu.matmul %23, %24, %cst_17 {dimension_numbers = #tpu.dot_dimension_numbers<[1], [0], [0], [1], [0, 0, 1, 1], [], []>} : vector<128x64xbf16>, vector<64x128xbf16>, vector<128x128xf32> -> vector<128x128xf32>
    %c0_18 = arith.constant 0 : index
    %c0_19 = arith.constant 0 : index
    %26 = vector.load %arg8[%c0_18, %c0_19] : memref<1x128xf32, #tpu.memory_space<vmem>>, vector<1x128xf32>
    %27 = vector.broadcast %26 : vector<1x128xf32> to vector<128x128xf32>
    %28 = arith.addf %25, %27 : vector<128x128xf32>
    %29 = math.tanh %28 : vector<128x128xf32>
    %30 = arith.truncf %29 : vector<128x128xf32> to vector<128x128xbf16>
    %c0_20 = arith.constant 0 : index
    %c0_21 = arith.constant 0 : index
    %31 = vector.load %arg9[%c0_20, %c0_21] : memref<128x256xbf16, #tpu.memory_space<vmem>>, vector<128x256xbf16>
    %cst_22 = arith.constant dense<0.000000e+00> : vector<128x256xf32>
    %32 = tpu.matmul %30, %31, %cst_22 {dimension_numbers = #tpu.dot_dimension_numbers<[1], [0], [0], [1], [0, 0, 1, 1], [], []>} : vector<128x128xbf16>, vector<128x256xbf16>, vector<128x256xf32> -> vector<128x256xf32>
    %c0_23 = arith.constant 0 : index
    %c0_24 = arith.constant 0 : index
    %33 = vector.load %arg10[%c0_23, %c0_24] : memref<1x256xf32, #tpu.memory_space<vmem>>, vector<1x256xf32>
    %34 = vector.broadcast %33 : vector<1x256xf32> to vector<128x256xf32>
    %35 = arith.addf %32, %34 : vector<128x256xf32>
    %36 = arith.truncf %35 : vector<128x256xf32> to vector<128x256xbf16>
    %c0_25 = arith.constant 0 : index
    %c0_26 = arith.constant 0 : index
    %37 = vector.load %arg11[%c0_25, %c0_26] : memref<128x256xbf16, #tpu.memory_space<vmem>>, vector<128x256xbf16>
    tpu.vector_store %arg11[%c0_25, %c0_26], %36 {strides = array<i32>} : memref<128x256xbf16, #tpu.memory_space<vmem>>, vector<128x256xbf16>,
    return
  }
  func.func @transform_0(%arg0: i32) -> (i32, i32) {
    %c0_i32 = arith.constant 0 : i32
    %c0_i32_0 = arith.constant 0 : i32
    return %arg0, %c0_i32 : i32, i32
  }
  func.func @transform_1(%arg0: i32) -> (i32, i32) {
    %c0_i32 = arith.constant 0 : i32
    %c0_i32_0 = arith.constant 0 : i32
    return %arg0, %c0_i32 : i32, i32
  }
  func.func @transform_2(%arg0: i32) -> (i32, i32) {
    %c0_i32 = arith.constant 0 : i32
    %c0_i32_0 = arith.constant 0 : i32
    %c0_i32_1 = arith.constant 0 : i32
    return %c0_i32, %c0_i32_0 : i32, i32
  }
  func.func @transform_3(%arg0: i32) -> (i32, i32) {
    %c0_i32 = arith.constant 0 : i32
    %c0_i32_0 = arith.constant 0 : i32
    %c0_i32_1 = arith.constant 0 : i32
    return %c0_i32, %c0_i32_0 : i32, i32
  }
  func.func @transform_4(%arg0: i32) -> (i32, i32) {
    %c0_i32 = arith.constant 0 : i32
    %c0_i32_0 = arith.constant 0 : i32
    %c0_i32_1 = arith.constant 0 : i32
    return %c0_i32, %c0_i32_0 : i32, i32
  }
  func.func @transform_5(%arg0: i32) -> (i32, i32) {
    %c0_i32 = arith.constant 0 : i32
    %c0_i32_0 = arith.constant 0 : i32
    %c0_i32_1 = arith.constant 0 : i32
    return %c0_i32, %c0_i32_0 : i32, i32
  }
  func.func @transform_6(%arg0: i32) -> (i32, i32) {
    %c0_i32 = arith.constant 0 : i32
    %c0_i32_0 = arith.constant 0 : i32
    %c0_i32_1 = arith.constant 0 : i32
    return %c0_i32, %c0_i32_0 : i32, i32
  }
  func.func @transform_7(%arg0: i32) -> (i32, i32) {
    %c0_i32 = arith.constant 0 : i32
    %c0_i32_0 = arith.constant 0 : i32
    %c0_i32_1 = arith.constant 0 : i32
    return %c0_i32, %c0_i32_0 : i32, i32
  }
  func.func @transform_8(%arg0: i32) -> (i32, i32) {
    %c0_i32 = arith.constant 0 : i32
    %c0_i32_0 = arith.constant 0 : i32
    %c0_i32_1 = arith.constant 0 : i32
    return %c0_i32, %c0_i32_0 : i32, i32
  }
  func.func @transform_9(%arg0: i32) -> (i32, i32) {
    %c0_i32 = arith.constant 0 : i32
    %c0_i32_0 = arith.constant 0 : i32
    %c0_i32_1 = arith.constant 0 : i32
    return %c0_i32, %c0_i32_0 : i32, i32
  }
  func.func @transform_10(%arg0: i32) -> (i32, i32) {
    %c0_i32 = arith.constant 0 : i32
    %c0_i32_0 = arith.constant 0 : i32
    return %arg0, %c0_i32 : i32, i32
  }
  func.func @transform_11(%arg0: i32) -> (i32, i32) {
    %c0_i32 = arith.constant 0 : i32
    %c0_i32_0 = arith.constant 0 : i32
    return %arg0, %c0_i32 : i32, i32
  }
}

</mosaic_0001>

<bundles_post_ra>
// kernel: tpu_custom_call.1
= control target key start
LH: loop header
LB: loop body
LE: loop exit
PB: predicated region body
PF: predicated region fallthrough
CT: control target
= control target key end

     0   :  { %17 = vsyncpa [#allocation3], 0  ;;  %s3083_s0 = inlined_call_operand.hbm [shape: f32[256,256], index: 0, kind: input, shape index: {}]   ;;  %s3084_s1 = inlined_call_operand.vmem [shape: f32[256,64], index: 1, kind: input, shape index: {}]   ;;  %s3085_s2 = inlined_call_operand.vmem [shape: bf16[256,128], index: 2, kind: input, shape index: {}]   ;;  %s3086_s3 = inlined_call_operand.vmem [shape: f32[1,128], index: 3, kind: input, shape index: {}]   ;;  %s3087_s4 = inlined_call_operand.vmem [shape: bf16[128,128], index: 4, kind: input, shape index: {}]   ;;  %s3088_s5 = inlined_call_operand.vmem [shape: f32[1,128], index: 5, kind: input, shape index: {}]   ;;  %s3089_s6 = inlined_call_operand.vmem [shape: bf16[64,128], index: 6, kind: input, shape index: {}]   ;;  %s3090_s7 = inlined_call_operand.vmem [shape: f32[1,128], index: 7, kind: input, shape index: {}]   ;;  %s3091_s8 = inlined_call_operand.vmem [shape: bf16[128,256], index: 8, kind: input, shape index: {}]   ;;  %s3092_s9 = inlined_call_operand.vmem [shape: f32[1,256], index: 9, kind: input, shape index: {}]   ;;  %s3093_s10 = inlined_call_operand.hbm [shape: bf16[256,256], index: 10, kind: output, shape index: {0}]   ;;  %s3094_s11 = inlined_call_operand.hbm [shape: f32[256,128], index: 11, kind: output, shape index: {1}]  }
   0x1   :  { %19 = vsyncpa [#allocation3 + $0x1], 0 }
   0x2   :  { %20 = vsyncpa [#allocation4], 0 }
   0x3   :  { %22 = vsyncpa [#allocation4 + $0x1], 0 }
   0x4   :  { %23 = vsyncpa [#allocation7], 0 }
   0x5   :  { %25 = vsyncpa [#allocation7 + $0x1], 0  ;;  %s2446_s17 = smov 0   ;;  %s2448_s18 = smov 0  }
   0x6   :  { %s2450_s19 = smov 0   ;;  %s2452_s20 = smov 0  }
   0x7 LB: > { %3102 = sst [smem:[#allocation11_spill]] %s2371_s19  ;;  %s2467_s21 = sadd.s32 4294967295, %s2375_s20   ;;  %s2375_s20 = sphi %s2452_s20, %s3117_s20   ;;  %s2371_s19 = sphi %s2450_s19, %s3119_s19   ;;  %s2367_s18 = sphi %s2448_s18, %s3121_s18   ;;  %s2363_s17 = sphi %s2446_s17, %s3120_s17  }
   0x8   : > { %s1770_s22 = sadd.s32 4294967294, %s2375_s20   ;;  %s2471_s23 = sadd.s32 1, %s2375_s20  }
   0x9   : > { %3103 = sst [smem:[#allocation12_spill]] %s2471_s23  ;;  %s38_s24 = sadd.s32 1, %s2371_s19 }
   0xa   : > { %s35_s25 = ssub.s32 %s2375_s20, %s2471_s23  ;;  %p45_p0 = scmp.ne.s32.totalorder %s2371_s19, %s2367_s18 }
   0xb   : > { %p36_p1 = scmp.eq.s32.totalorder %s35_s25, 0  ;;  %p46_p2 = scmp.eq.s32.totalorder %s2375_s20, 0 }
   0xc   : > { %p51_p3 = scmp.ne.s32.totalorder %s2367_s18, %s2363_s17  ;;  %p52_p4 = scmp.eq.s32.totalorder %s2467_s21, 0 }
   0xd   : > { %s2483_s26 = scalar_select %p36_p1, %s2371_s19, %s38_s24  }
   0xe   : > { %p2485_p5 = por %p46_p2, %p45_p0  ;;  %p2489_p6 = por %p52_p4, %p51_p3 }
   0xf   : > { %3104 = sst [smem:[#allocation13_spill]] %s2483_s26  ;;  %p269_p7 = scmp.eq.s32.totalorder %s2467_s21, 1 }
  0x10   : > { %s3106_s28 = scalar_select %p2489_p6, 1, 0 }
  0x11   : > { %p275_p8 = scmp.eq.s32.totalorder %s1770_s22, 1  ;;  %p2065_p10 = scmp.lt.s32.totalorder %s2375_s20, 2 }
  0x12   : > { %p2496_p11 = por %p269_p7, %p45_p0  ;;  %s345_s12 = sand.u32 1, %s2371_s19  }
  0x13   : > { %p2500_p12 = por %p275_p8, %p51_p3  ;;  %s1864_s13 = sshll.u32 %s2375_s20, 12 }
  0x14   : > { %s3107_s29 = scalar_select %p2496_p11, 1, 0 }
  0x15   : > { %s3108_s30 = scalar_select %p2500_p12, 1, 0 }
  0x16   : > { %s1773_s14 = sshll.u32 %s345_s12, 8  ;;  %s2509_s24 = scalar_lea.hbm %s3083_s0, %s1864_s13 }
  0x17   : > { %3109 = sst [smem:[#allocation14_spill]] %s3108_s30  ;;  %s349_s22 = scalar_lea.vmem [#allocation2], %s1773_s14 }
  0x18   : > { %s357_s25 = sshll.u32 %s349_s22, 4  ;;  %p2513_p13 = pnand %p2065_p10, %p2485_p5  ;;  %s2517_s25 = int_to_ptr.vmem [resolvable:$true] %s357_s25 }
  0x19   : > { %s2519_s19 = scalar_lea.sflag [#allocation3], %s345_s12  ;;  %s2253_s23 = scalar_lea.hbm %s2509_s24, 4096 }
  0x1a   : > { %p2254_p0 = scmp.ne.s32.totalorder %s2509_s24, %s2253_s23  ;;  %p2255_p1 = pneg %p2513_p13 }
  0x1b   : > { %s2258_s14 = scalar_lea.hbm %s3083_s0, 8192  ;;  %p2259_p4 = scmp.lt.s32.totalorder %s2509_s24, %s3083_s0 }
  0x1c   : > { %p2256_p2 = pnand %p2255_p1, %p2254_p0  ;;  %p2260_p5 = scmp.lt.s32.totalorder %s2258_s14, %s2253_s23 }
  0x1e   : > { %p2257_p3 = pneg %p2256_p2  ;;  %p2261_p7 = por %p2260_p5, %p2259_p4 }
  0x20   : > { %p2262_p8 = pnand %p2261_p7, %p2257_p3 }
  0x22   : > { %2265 = shalt.err (!%p2262_p8)
}
  0x23   : > { %s2266_s12 = scalar_lea.vmem %s2517_s25, 4096  ;;  %s2377_s22 = smov [#allocation2]  }
  0x24   : > { %p2267_p10 = scmp.ne.s32.totalorder %s2517_s25, %s2266_s12  ;;  %s2271_s30 = sshll.u32 %s2377_s22, 4  ;;  %s2272_s30 = int_to_ptr.vmem [resolvable:$false] %s2271_s30 }
  0x25   : > { %s2273_s13 = scalar_lea.vmem %s2272_s30, 8192  ;;  %p2274_p2 = scmp.lt.s32.totalorder %s2517_s25, %s2272_s30 }
  0x26   : > { %p2269_p9 = pnand %p2267_p10, %p2255_p1  ;;  %p2275_p12 = scmp.lt.s32.totalorder %s2273_s13, %s2266_s12 }
  0x28   : > { %p2270_p0 = pneg %p2269_p9  ;;  %p2276_p11 = por %p2275_p12, %p2274_p2 }
  0x2a   : > { %p2277_p6 = pnand %p2276_p11, %p2270_p0 }
  0x2c   : > { %2280 = shalt.err (!%p2277_p6)
}
  0x2d   : > { %s2378_s23 = smov 256   ;;  %s2379_s15 = smov 16  }
  0x2e   : > { %2057 = dma.hbm_to_vmem [thread:$0]  (!%p2513_p13), %s2509_s24, 4096, %s2517_s25, %s2519_s19, %s2378_s23, %s2378_s23, %s2379_s15  }
  0x2f   : > { %p1777_p9 = scmp.ge.s32.totalorder %s2375_s20, 1  ;;  %p374_p1 = scmp.lt.s32.totalorder %s2375_s20, 3 }
  0x31   : > { %p375_p3 = pnand %p1777_p9, %p374_p1 }
  0x32   : > { %s2543_s30 = sand.u32 (!%p375_p3), 1, %s2367_s18   ;;  %p3111_p6 = scmp.ne.s32.totalorder (!%p375_p3), %s3106_s28, 0 }
  0x33   : > { %378 = sbr.rel (%p375_p3) target bundleno = 1150 (0x47e), region = 60  ;;  %s1778_s14 = sshll.u32 (!%p375_p3), %s2543_s30, 8 }
  0x34   : > { %s381_s27 = scalar_lea.sflag (!%p375_p3), [#allocation3], %s2543_s30  ;;  %s2547_s16 = scalar_lea.vmem (!%p375_p3), [#allocation2], %s1778_s14 }
  0x38   : > { %2350 = dma.done.wait (%p3111_p6), %s381_s27, 4096  }
  0x39   : > { %2352 = vsyncadd (%p3111_p6), %s381_s27, 4294963200  ;;  %v2105_v0 = vld [vmem:[%s3085_s2 + $0x78] sm:$0xff]   ;;  %v2107_v2 = vld [vmem:[%s3085_s2 + $0x70] sm:$0xff]   ;;  %s1779_s13 = sshll.u32 %s2543_s30, 7  ;;  %s2380_s19 = smov 64   ;;  %vm1138_vm0 = vcmask 523264  }
  0x3a   : > { %v2106_v1 = vld [vmem:[%s3085_s2 + $0x38] sm:$0xff]   ;;  %1884 = vmatprep.subr.bf16.mxu0 %v2105_v0  ;;  %2032 = vmatprep.subr.bf16.mxu1 %v2105_v0  ;;  %v2108_v3 = vld [vmem:[%s3085_s2 + $0x30] sm:$0xff]   ;;  %v2109_v4 = vld [vmem:[%s3085_s2 + $0x68] sm:$0xff]   ;;  %s2698_s15 = scalar_lea.vmem [#allocation6], %s1779_s13  ;;  %s1781_s14 = sshll.u32 %s2467_s21, 4 }
  0x3b   : > { %1885 = vmatpush3.bf16.msra.mxu0 %v2106_v1  ;;  %2040 = vmatpush3.bf16.msra.mxu1 %v2106_v1  ;;  %v2110_v5 = vld [vmem:[%s3085_s2 + $0x28] sm:$0xff]   ;;  %v2111_v6 = vld [vmem:[%s3085_s2 + $0x60] sm:$0xff]   ;;  %v2113_v8 = vld [vmem:[%s3085_s2 + $0x58] sm:$0xff]   ;;  %p435_p11 = scmp.lt.s32.totalorder %s1781_s14, 31  ;;  %s3101_s23 = sshll.u32 %s2467_s21, 11 }
  0x3c   : > { %1886 = vmatprep.subr.bf16.mxu0 %v2107_v2  ;;  %2033 = vmatprep.subr.bf16.mxu1 %v2107_v2  ;;  %v2112_v7 = vld [vmem:[%s3085_s2 + $0x20] sm:$0xff]   ;;  %v2114_v9 = vld [vmem:[%s3085_s2 + $0x18] sm:$0xff]   ;;  %v2115_v10 = vld [vmem:[%s3085_s2 + $0x50] sm:$0xff]   ;;  %s1653_s26 = sshll.u32 %s2698_s15, 4  ;;  %p3112_p13 = scmp.ne.s32.totalorder %s3107_s29, 0  ;;  %s2944_s26 = int_to_ptr.vmem [resolvable:$true] %s1653_s26 }
  0x3d   : > { %v444_v11 = vld [vmem:[%s2547_s16 + $0x8] sm:$0xff]  ;;  %v446_v12 = vld [vmem:[%s2547_s16 + $0x18] sm:$0xff]  ;;  %v2116_v14 = vld [vmem:[%s3085_s2 + $0x10] sm:$0xff]   ;;  %s3123_s14 = smov (!%p435_p11, %s1781_s14), 31 }
  0x3e   : > { %v476_v13 = vpack.c.bf16 %v446_v12, %v444_v11  ;;  %v460_v15 = vld [vmem:[%s2547_s16 + $0x88] sm:$0xff]  ;;  %v462_v16 = vld [vmem:[%s2547_s16 + $0x98] sm:$0xff]  ;;  %v2119_v20 = vld [vmem:[%s3085_s2 + $0x40] sm:$0xff]   ;;  %s1782_s27 = sshll.u32 %s3123_s14, 3 }
  0x3f   : > { %1887 = vmatpush3.bf16.msra.mxu0 %v2108_v3  ;;  %2041 = vmatpush3.bf16.msra.mxu1 %v2108_v3  ;;  %v2117_v17 = vld [vmem:[%s3085_s2 + $0x48] sm:$0xff]   ;;  %v484_v18 = vpack.c.bf16 %v462_v16, %v460_v15  ;;  %v2120_v21 = vld [vmem:[%s3085_s2] sm:$0xff]   ;;  %v445_v23 = vld [vmem:[%s2547_s16 + $0x10] sm:$0xff]  ;;  %s2828_s24 = scalar_lea.vmem %s3084_s1, %s1782_s27  ;;  %s2941_s27 = scalar_lea.hbm %s3094_s11, %s3101_s23 }
  0x40   : > { %1888 = vmatprep.subr.bf16.mxu0 %v2109_v4  ;;  %2034 = vmatprep.subr.bf16.mxu1 %v2109_v4  ;;  %v2118_v19 = vld [vmem:[%s3085_s2 + $0x8] sm:$0xff]   ;;  %v443_v22 = vld [vmem:[%s2547_s16] sm:$0xff]  ;;  %v450_v25 = vld [vmem:[%s2547_s16 + $0x38] sm:$0xff] }
  0x41   : > { %658 = vmatprep.mubr.bf16.mxu0 %v476_v13  ;;  %690 = vmatprep.mubr.bf16.mxu1 %v484_v18  ;;  %v448_v24 = vld [vmem:[%s2547_s16 + $0x28] sm:$0xff]  ;;  %v459_v26 = vld [vmem:[%s2547_s16 + $0x80] sm:$0xff]  ;;  %v461_v27 = vld [vmem:[%s2547_s16 + $0x90] sm:$0xff]  ;;  %v475_v30 = vpack.c.bf16 %v445_v23, %v443_v22 }
  0x42   : > { %v464_v28 = vld [vmem:[%s2547_s16 + $0xa8] sm:$0xff]  ;;  %v466_v29 = vld [vmem:[%s2547_s16 + $0xb8] sm:$0xff]  ;;  %v478_v31 = vpack.c.bf16 %v450_v25, %v448_v24  ;;  %v483_v32 = vpack.c.bf16 %v461_v27, %v459_v26  ;;  %v447_v34 = vld [vmem:[%s2547_s16 + $0x20] sm:$0xff] }
  0x43   : > { %1889 = vmatpush3.bf16.msra.mxu0 %v2110_v5  ;;  %2042 = vmatpush3.bf16.msra.mxu1 %v2110_v5  ;;  %v486_v33 = vpack.c.bf16 %v466_v29, %v464_v28  ;;  %v449_v35 = vld [vmem:[%s2547_s16 + $0x30] sm:$0xff]  ;;  %v452_v36 = vld [vmem:[%s2547_s16 + $0x48] sm:$0xff]  ;;  %v454_v37 = vld [vmem:[%s2547_s16 + $0x58] sm:$0xff] }
  0x44   : > { %1890 = vmatprep.subr.bf16.mxu0 %v2111_v6  ;;  %2035 = vmatprep.subr.bf16.mxu1 %v2111_v6  ;;  %v463_v38 = vld [vmem:[%s2547_s16 + $0xa0] sm:$0xff]  ;;  %v465_v39 = vld [vmem:[%s2547_s16 + $0xb0] sm:$0xff]  ;;  %v468_v40 = vld [vmem:[%s2547_s16 + $0xc8] sm:$0xff]  ;;  %v477_v42 = vpack.c.bf16 %v449_v35, %v447_v34  ;;  %v480_v43 = vpack.c.bf16 %v454_v37, %v452_v36 }
  0x45   : > { %v470_v41 = vld [vmem:[%s2547_s16 + $0xd8] sm:$0xff]  ;;  %v485_v44 = vpack.c.bf16 %v465_v39, %v463_v38  ;;  %v451_v46 = vld [vmem:[%s2547_s16 + $0x40] sm:$0xff]  ;;  %v453_v47 = vld [vmem:[%s2547_s16 + $0x50] sm:$0xff] }
  0x46   : > { %v488_v45 = vpack.c.bf16 %v470_v41, %v468_v40  ;;  %v456_v48 = vld [vmem:[%s2547_s16 + $0x68] sm:$0xff]  ;;  %v458_v49 = vld [vmem:[%s2547_s16 + $0x78] sm:$0xff]  ;;  %v467_v50 = vld [vmem:[%s2547_s16 + $0xc0] sm:$0xff]  ;;  %v479_v54 = vpack.c.bf16 %v453_v47, %v451_v46 }
  0x47   : > { %1891 = vmatpush3.bf16.msra.mxu0 %v2112_v7  ;;  %2043 = vmatpush3.bf16.msra.mxu1 %v2112_v7  ;;  %v469_v51 = vld [vmem:[%s2547_s16 + $0xd0] sm:$0xff]  ;;  %v472_v52 = vld [vmem:[%s2547_s16 + $0xe8] sm:$0xff]  ;;  %v474_v53 = vld [vmem:[%s2547_s16 + $0xf8] sm:$0xff]  ;;  %v482_v55 = vpack.c.bf16 %v458_v49, %v456_v48 }
  0x48   : > { %1892 = vmatprep.subr.bf16.mxu0 %v2113_v8  ;;  %2036 = vmatprep.subr.bf16.mxu1 %v2113_v8  ;;  %v487_v56 = vpack.c.bf16 %v469_v51, %v467_v50  ;;  %v490_v57 = vpack.c.bf16 %v474_v53, %v472_v52  ;;  %v455_v58 = vld [vmem:[%s2547_s16 + $0x60] sm:$0xff]  ;;  %v457_v59 = vld [vmem:[%s2547_s16 + $0x70] sm:$0xff]  ;;  %v2121_v0 = vld [vmem:[%s3087_s4 + $0x38] sm:$0xff]  }
  0x49   : > { %v471_v60 = vld [vmem:[%s2547_s16 + $0xe0] sm:$0xff]  ;;  %v473_v61 = vld [vmem:[%s2547_s16 + $0xf0] sm:$0xff]  ;;  %v481_v62 = vpack.c.bf16 %v457_v59, %v455_v58  ;;  %v2123_v2 = vld [vmem:[%s3087_s4 + $0x28] sm:$0xff]   ;;  %s1623_s16 = scalar_lea.sflag [#allocation7], %s2543_s30 }
  0x4a   : > { %v489_v63 = vpack.c.bf16 %v473_v61, %v471_v60  ;;  %v2122_v1 = vld [vmem:[%s3087_s4 + $0x30] sm:$0xff]   ;;  %v2124_v3 = vld [vmem:[%s3087_s4 + $0x20] sm:$0xff]   ;;  %v2125_v4 = vld [vmem:[%s3087_s4 + $0x18] sm:$0xff]  }
  0x4b   : > { %1893 = vmatpush3.bf16.msra.mxu0 %v2114_v9  ;;  %2044 = vmatpush3.bf16.msra.mxu1 %v2114_v9  ;;  %v2126_v5 = vld [vmem:[%s3087_s4 + $0x10] sm:$0xff]   ;;  %v2127_v6 = vld [vmem:[%s3087_s4 + $0x8] sm:$0xff]   ;;  %v2128_v7 = vld [vmem:[%s3087_s4] sm:$0xff]  }
  0x4c   : > { %1894 = vmatprep.subr.bf16.mxu0 %v2115_v10  ;;  %2037 = vmatprep.subr.bf16.mxu1 %v2115_v10  ;;  %v2660_v11 = vld [vmem:[%s3086_s3] ss:$0 sm:$0xff] }
  0x4f   : > { %1895 = vmatpush3.bf16.msra.mxu0 %v2116_v14  ;;  %2045 = vmatpush3.bf16.msra.mxu1 %v2116_v14 }
  0x50   : > { %1896 = vmatprep.subr.bf16.mxu0 %v2117_v17  ;;  %2038 = vmatprep.subr.bf16.mxu1 %v2117_v17 }
  0x53   : > { %1897 = vmatpush3.bf16.msra.mxu0 %v2118_v19  ;;  %2046 = vmatpush3.bf16.msra.mxu1 %v2118_v19 }
  0x54   : > { %1898 = vmatprep.subr.bf16.mxu0 %v2119_v20  ;;  %2039 = vmatprep.subr.bf16.mxu1 %v2119_v20 }
  0x57   : > { %1899 = vmatpush3.bf16.msra.mxu0 %v2120_v21  ;;  %2047 = vmatpush3.bf16.msra.mxu1 %v2120_v21 }
  0x58   : > { %1976 = vmatprep.subr.bf16.mxu1 %v2121_v0 }
  0x5a   : > { %659 = vmatmul.mubr.bf16.vlgmr.msra.gmra.mxu0 %v475_v30  ;;  %691 = vmatmul.mubr.bf16.vlgmr.msra.gmra.mxu1 %v483_v32 }
  0x5b   : > { %666 = vmatprep.mubr.bf16.mxu0 %v478_v31  ;;  %698 = vmatprep.mubr.bf16.mxu1 %v486_v33 }
  0x5c   : > { %1977 = vmatpush3.bf16.msra.mxu1 %v2121_v0 }
  0x5d   : > { %1978 = vmatprep.subr.bf16.mxu1 %v2122_v1 }
  0x60   : > { %1979 = vmatpush3.bf16.msra.mxu1 %v2122_v1 }
  0x61   : > { %1980 = vmatprep.subr.bf16.mxu1 %v2123_v2 }
  0x62   : > { %667 = vmatmul.mubr.bf16.gmra.mxu0 %v477_v42  ;;  %699 = vmatmul.mubr.bf16.gmra.mxu1 %v485_v44 }
  0x63   : > { %674 = vmatprep.mubr.bf16.mxu0 %v480_v43  ;;  %706 = vmatprep.mubr.bf16.mxu1 %v488_v45 }
  0x64   : > { %1981 = vmatpush3.bf16.msra.mxu1 %v2123_v2 }
  0x65   : > { %1982 = vmatprep.subr.bf16.mxu1 %v2124_v3 }
  0x68   : > { %1983 = vmatpush3.bf16.msra.mxu1 %v2124_v3 }
  0x69   : > { %1984 = vmatprep.subr.bf16.mxu1 %v2125_v4 }
  0x6a   : > { %675 = vmatmul.mubr.bf16.gmra.mxu0 %v479_v54  ;;  %707 = vmatmul.mubr.bf16.gmra.mxu1 %v487_v56 }
  0x6b   : > { %682 = vmatprep.mubr.bf16.mxu0 %v482_v55  ;;  %714 = vmatprep.mubr.bf16.mxu1 %v490_v57 }
  0x6c   : > { %1985 = vmatpush3.bf16.msra.mxu1 %v2125_v4 }
  0x6d   : > { %1986 = vmatprep.subr.bf16.mxu1 %v2126_v5 }
  0x70   : > { %1987 = vmatpush3.bf16.msra.mxu1 %v2126_v5 }
  0x71   : > { %1988 = vmatprep.subr.bf16.mxu1 %v2127_v6 }
  0x72   : > { %683 = vmatmul.mubr.bf16.gmra.mxu0 %v481_v62  ;;  %715 = vmatmul.mubr.bf16.gmra.mxu1 %v489_v63 }
  0x74   : > { %1989 = vmatpush3.bf16.msra.mxu1 %v2127_v6 }
  0x75   : > { %1990 = vmatprep.subr.bf16.mxu1 %v2128_v7 }
  0x78   : > { %1991 = vmatpush3.bf16.msra.mxu1 %v2128_v7 }
 0x11a   : > { %v1900_v8 = vpop.f32.mrf.mxu0  ;;  %v1924_v9 = vpop.f32.mrf.mxu1 }
 0x11c   : > { %v1901_v10 = vpop.f32.mrf.mxu0  ;;  %v1925_v13 = vpop.f32.mrf.mxu1 }
 0x11d   : > { %v1902_v12 = vadd.f32 %v1901_v10, %v1900_v8  ;;  %v1926_v43 = vadd.f32 %v1925_v13, %v1924_v9 }
 0x11e   : > { %v1903_v14 = vpop.f32.mrf.mxu0  ;;  %v1927_v15 = vpop.f32.mrf.mxu1 }
 0x11f   : > { %v661_v16 = vadd.f32 %v1902_v12, %v2660_v11  ;;  %v693_v53 = vadd.f32 %v1926_v43, %v2660_v11 }
 0x120   : > { %v1904_v17 = vpop.f32.mrf.mxu0  ;;  %v1928_v19 = vpop.f32.mrf.mxu1 }
 0x121   : > { %v1905_v18 = vadd.f32 %v1904_v17, %v1903_v14  ;;  %2157 = vtanh.f32 %v661_v16  ;;  %v1929_v47 = vadd.f32 %v1928_v19, %v1927_v15 }
 0x122   : > { %v1906_v20 = vpop.f32.mrf.mxu0  ;;  %v1930_v22 = vpop.f32.mrf.mxu1 }
 0x123   : > { %v664_v21 = vadd.f32 %v1905_v18, %v2660_v11  ;;  %v696_v55 = vadd.f32 %v1929_v47, %v2660_v11 }
 0x124   : > { %v1907_v23 = vpop.f32.mrf.mxu0  ;;  %v1931_v25 = vpop.f32.mrf.mxu1 }
 0x125   : > { %2159 = vtanh.f32 %v664_v21  ;;  %v1908_v24 = vadd.f32 %v1907_v23, %v1906_v20  ;;  %v1932_v58 = vadd.f32 %v1931_v25, %v1930_v22 }
 0x126   : > { %v1909_v26 = vpop.f32.mrf.mxu0  ;;  %v1933_v27 = vpop.f32.mrf.mxu1 }
 0x127   : > { %v669_v28 = vadd.f32 %v1908_v24, %v2660_v11  ;;  %v701_v4 = vadd.f32 %v1932_v58, %v2660_v11 }
 0x128   : > { %v1910_v29 = vpop.f32.mrf.mxu0  ;;  %v1934_v31 = vpop.f32.mrf.mxu1 }
 0x129   : > { %v1911_v30 = vadd.f32 %v1910_v29, %v1909_v26  ;;  %2161 = vtanh.f32 %v669_v28  ;;  %v1935_v61 = vadd.f32 %v1934_v31, %v1933_v27 }
 0x12a   : > { %v1912_v32 = vpop.f32.mrf.mxu0  ;;  %v1936_v34 = vpop.f32.mrf.mxu1 }
 0x12b   : > { %v672_v33 = vadd.f32 %v1911_v30, %v2660_v11  ;;  %v704_v7 = vadd.f32 %v1935_v61, %v2660_v11 }
 0x12c   : > { %v1913_v35 = vpop.f32.mrf.mxu0  ;;  %v1937_v37 = vpop.f32.mrf.mxu1 }
 0x12d   : > { %2163 = vtanh.f32 %v672_v33  ;;  %v1914_v36 = vadd.f32 %v1913_v35, %v1912_v32  ;;  %v1938_v0 = vadd.f32 %v1937_v37, %v1936_v34  ;;  %v2129_v33 = vld [vmem:[%s3089_s6 + $0x18] sm:$0xff]   ;;  %v2130_v34 = vld [vmem:[%s3089_s6 + $0x10] sm:$0xff]   ;;  %v2131_v35 = vld [vmem:[%s3089_s6 + $0x8] sm:$0xff]  }
 0x12e   : > { %v1915_v38 = vpop.f32.mrf.mxu0  ;;  %v1939_v39 = vpop.f32.mrf.mxu1  ;;  %2008 = vmatprep.subr.bf16.mxu1 %v2129_v33 }
 0x12f   : > { %v677_v40 = vadd.f32 %v1914_v36, %v2660_v11  ;;  %v2158_v42 = vpop.eup %2157  ;;  %v709_v8 = vadd.f32 %v1938_v0, %v2660_v11  ;;  %v2691_v36 = vld [vmem:[%s3088_s5] ss:$0 sm:$0xff] }
 0x130   : > { %v1916_v41 = vpop.f32.mrf.mxu0  ;;  %v1940_v45 = vpop.f32.mrf.mxu1 }
 0x131   : > { %v1917_v44 = vadd.f32 %v1916_v41, %v1915_v38  ;;  %2165 = vtanh.f32 %v677_v40  ;;  %v1941_v2 = vadd.f32 %v1940_v45, %v1939_v39 }
 0x132   : > { %v2160_v46 = vpop.eup %2159  ;;  %v1918_v48 = vpop.f32.mrf.mxu0 }
 0x133   : > { %v680_v49 = vadd.f32 %v1917_v44, %v2660_v11  ;;  %v739_v50 = vpack.c.bf16 %v2160_v46, %v2158_v42  ;;  %v1942_v51 = vpop.f32.mrf.mxu1  ;;  %v712_v9 = vadd.f32 %v1941_v2, %v2660_v11 }
 0x134   : > { %v1919_v52 = vpop.f32.mrf.mxu0 }
 0x135   : > { %2167 = vtanh.f32 %v680_v49  ;;  %v1920_v54 = vadd.f32 %v1919_v52, %v1918_v48  ;;  %1992 = vmatprep.mubr.bf16.mxu1 %v739_v50  ;;  %v1943_v57 = vpop.f32.mrf.mxu1 }
 0x136   : > { %v1921_v56 = vpop.f32.mrf.mxu0  ;;  %v2162_v62 = vpop.eup %2161  ;;  %2169 = vtanh.f32 %v693_v53  ;;  %v1944_v12 = vadd.f32 %v1943_v57, %v1942_v51  ;;  %v2132_v53 = vld [vmem:[%s3089_s6] sm:$0xff]  }
 0x137   : > { %v685_v59 = vadd.f32 %v1920_v54, %v2660_v11  ;;  %2171 = vtanh.f32 %v696_v55  ;;  %v1945_v3 = vpop.f32.mrf.mxu1 }
 0x138   : > { %v1922_v60 = vpop.f32.mrf.mxu0  ;;  %v717_v17 = vadd.f32 %v1944_v12, %v2660_v11 }
 0x139   : > { %v1923_v63 = vadd.f32 %v1922_v60, %v1921_v56  ;;  %2173 = vtanh.f32 %v685_v59  ;;  %v1946_v10 = vpop.f32.mrf.mxu1 }
 0x13a   : > { %v2164_v1 = vpop.eup %2163  ;;  %v1947_v14 = vadd.f32 %v1946_v10, %v1945_v3 }
 0x13b   : > { %v688_v5 = vadd.f32 %v1923_v63, %v2660_v11  ;;  %v740_v6 = vpack.c.bf16 %v2164_v1, %v2162_v62 }
 0x13c   : > { %v720_v18 = vadd.f32 %v1947_v14, %v2660_v11 }
 0x13d   : > { %2175 = vtanh.f32 %v688_v5  ;;  %1993 = vmatmul.mubr.bf16.vlgmr.msra.gmra.mxu1 %v740_v6 }
 0x13e   : > { %2177 = vtanh.f32 %v701_v4  ;;  %v2166_v13 = vpop.eup %2165  ;;  %2009 = vmatpush3.bf16.msra.mxu1 %v2129_v33 }
 0x13f   : > { %2179 = vtanh.f32 %v704_v7  ;;  %2010 = vmatprep.subr.bf16.mxu1 %v2130_v34 }
 0x140   : > { %2181 = vtanh.f32 %v709_v8 }
 0x141   : > { %2183 = vtanh.f32 %v712_v9 }
 0x142   : > { %v2168_v15 = vpop.eup %2167  ;;  %2185 = vtanh.f32 %v717_v17  ;;  %2011 = vmatpush3.bf16.msra.mxu1 %v2130_v34 }
 0x143   : > { %v741_v16 = vpack.c.bf16 %v2168_v15, %v2166_v13  ;;  %v2170_v19 = vpop.eup %2169  ;;  %2187 = vtanh.f32 %v720_v18  ;;  %2012 = vmatprep.subr.bf16.mxu1 %v2131_v35 }
 0x144   : > { %v2172_v20 = vpop.eup %2171 }
 0x145   : > { %1996 = vmatprep.mubr.bf16.mxu1 %v741_v16  ;;  %v743_v23 = vpack.c.bf16 %v2172_v20, %v2170_v19 }
 0x146   : > { %v2174_v21 = vpop.eup %2173  ;;  %2013 = vmatpush3.bf16.msra.mxu1 %v2131_v35 }
 0x147   : > { %2014 = vmatprep.subr.bf16.mxu1 %v2132_v53 }
 0x14a   : > { %v2176_v22 = vpop.eup %2175  ;;  %2015 = vmatpush3.bf16.msra.mxu1 %v2132_v53 }
 0x14b   : > { %v742_v24 = vpack.c.bf16 %v2176_v22, %v2174_v21  ;;  %v2178_v25 = vpop.eup %2177 }
 0x14c   : > { %v2180_v26 = vpop.eup %2179 }
 0x14d   : > { %1997 = vmatmul.mubr.bf16.gmra.mxu1 %v742_v24  ;;  %v2182_v27 = vpop.eup %2181  ;;  %v744_v29 = vpack.c.bf16 %v2180_v26, %v2178_v25 }
 0x14e   : > { %2000 = vmatprep.mubr.bf16.mxu1 %v743_v23  ;;  %v2184_v28 = vpop.eup %2183 }
 0x14f   : > { %v745_v30 = vpack.c.bf16 %v2184_v28, %v2182_v27  ;;  %v2186_v31 = vpop.eup %2185 }
 0x150   : > { %v2188_v11 = vpop.eup %2187 }
 0x151   : > { %v746_v32 = vpack.c.bf16 %v2188_v11, %v2186_v31 }
 0x155   : > { %2001 = vmatmul.mubr.bf16.gmra.mxu1 %v744_v29 }
 0x156   : > { %2004 = vmatprep.mubr.bf16.mxu1 %v745_v30 }
 0x15d   : > { %2005 = vmatmul.mubr.bf16.gmra.mxu1 %v746_v32 }
 0x1fd   : > { %v1994_v37 = vpop.f32.mrf.mxu1 }
 0x1fe   : > { %v2694_v38 = vadd.f32 %v1994_v37, %v2691_v36 }
 0x1ff   : > { %v852_v39 = vpop.f32.mrf.mxu1 }
 0x200   : > { %917 = vst [vmem:[%s2698_s15 + $0x10] sm:$0xff] %v2694_v38  ;;  %v933_v40 = vmul.f32 0.5, %v2694_v38  ;;  %v2704_v41 = vadd.f32 %v2691_v36, %v852_v39 }
 0x201   : > { %v1995_v42 = vpop.f32.mrf.mxu1 }
 0x202   : > { %v951_v43 = vmul.f32 1.442695, %v933_v40  ;;  %915 = vst [vmem:[%s2698_s15] sm:$0xff] %v2704_v41  ;;  %v931_v44 = vmul.f32 0.5, %v2704_v41  ;;  %v2710_v45 = vadd.f32 %v1995_v42, %v2691_v36 }
 0x203   : > { %v855_v46 = vpop.f32.mrf.mxu1 }
 0x204   : > { %2189 = vpow2.f32 %v951_v43  ;;  %v947_v47 = vmul.f32 1.442695, %v931_v44  ;;  %918 = vst [vmem:[%s2698_s15 + $0x18] sm:$0xff] %v2710_v45  ;;  %v934_v48 = vmul.f32 0.5, %v2710_v45  ;;  %v2716_v49 = vadd.f32 %v2691_v36, %v855_v46 }
 0x206   : > { %2191 = vpow2.f32 %v947_v47  ;;  %v953_v50 = vmul.f32 1.442695, %v934_v48  ;;  %916 = vst [vmem:[%s2698_s15 + $0x8] sm:$0xff] %v2716_v49  ;;  %v932_v51 = vmul.f32 0.5, %v2716_v49 }
 0x208   : > { %2193 = vpow2.f32 %v953_v50  ;;  %v949_v52 = vmul.f32 1.442695, %v932_v51 }
 0x20a   : > { %2195 = vpow2.f32 %v949_v52 }
 0x20d   : > { %v1998_v54 = vpop.f32.mrf.mxu1 }
 0x20e   : > { %v2725_v55 = vadd.f32 %v1998_v54, %v2691_v36 }
 0x20f   : > { %v868_v56 = vpop.f32.mrf.mxu1 }
 0x210   : > { %921 = vst [vmem:[%s2698_s15 + $0x30] sm:$0xff] %v2725_v55  ;;  %v2730_v57 = vadd.f32 %v2691_v36, %v868_v56  ;;  %v937_v59 = vmul.f32 0.5, %v2725_v55 }
 0x211   : > { %v2190_v58 = vpop.eup %2189  ;;  %v1999_v60 = vpop.f32.mrf.mxu1 }
 0x212   : > { %919 = vst [vmem:[%s2698_s15 + $0x20] sm:$0xff] %v2730_v57  ;;  %v935_v61 = vmul.f32 0.5, %v2730_v57  ;;  %v2737_v62 = vadd.f32 %v1999_v60, %v2691_v36  ;;  %1015 = vrot.lane.b32.xlu1 %v2190_v58, %s2380_s19  ;;  %v959_v4 = vmul.f32 1.442695, %v937_v59  ;;  %v2133_v58 = vld [vmem:[%s3091_s8 + $0x70] ss:$8 sps:$4 sm:$0xff]  }
 0x213   : > { %v2192_v63 = vpop.eup %2191  ;;  %v871_v0 = vpop.f32.mrf.mxu1  ;;  %v2135_v59 = vld [vmem:[%s3091_s8 + $0x74] ss:$8 sps:$4 sm:$0xff]   ;;  %v2138_v60 = vld [vmem:[%s3091_s8 + $0x64] ss:$8 sps:$4 sm:$0xff]  }
 0x214   : > { %v955_v1 = vmul.f32 1.442695, %v935_v61  ;;  %922 = vst [vmem:[%s2698_s15 + $0x38] sm:$0xff] %v2737_v62  ;;  %v2743_v2 = vadd.f32 %v2691_v36, %v871_v0  ;;  %1011 = vrot.lane.b32.xlu0 %v2192_v63, %s2380_s19  ;;  %v938_v5 = vmul.f32 0.5, %v2737_v62  ;;  %1392 = vmatprep.subr.bf16.mxu0 %v2135_v59  ;;  %v2136_v0 = vld [vmem:[%s3091_s8 + $0x60] ss:$8 sps:$4 sm:$0xff]  }
 0x215   : > { %v2194_v3 = vpop.eup %2193  ;;  %v2002_v6 = vpop.f32.mrf.mxu1  ;;  %1393 = vmatpush1.bf16.msra.mxu0 %v2133_v58 }
 0x216   : > { %2197 = vpow2.f32 %v955_v1  ;;  %920 = vst [vmem:[%s2698_s15 + $0x28] sm:$0xff] %v2743_v2  ;;  %v936_v7 = vmul.f32 0.5, %v2743_v2  ;;  %v2751_v8 = vadd.f32 %v2002_v6, %v2691_v36  ;;  %1017 = vrot.lane.b32.xlu1 %v2194_v3, %s2380_s19  ;;  %v961_v14 = vmul.f32 1.442695, %v938_v5  ;;  %1394 = vmatprep.subr.bf16.mxu0 %v2138_v60  ;;  %v979_v3 = vld [vmem:[%s2828_s24] sm:$0xff]  ;;  %v982_v5 = vld [vmem:[%s2828_s24 + $0x18] sm:$0xff] }
 0x217   : > { %v2196_v9 = vpop.eup %2195  ;;  %v884_v10 = vpop.f32.mrf.mxu1  ;;  %2199 = vpow2.f32 %v959_v4  ;;  %v981_v6 = vld [vmem:[%s2828_s24 + $0x10] sm:$0xff] }
 0x218   : > { %v957_v12 = vmul.f32 1.442695, %v936_v7  ;;  %925 = vst [vmem:[%s2698_s15 + $0x50] sm:$0xff] %v2751_v8  ;;  %v2757_v13 = vadd.f32 %v2691_v36, %v884_v10  ;;  %1013 = vrot.lane.b32.xlu0 %v2196_v9, %s2380_s19  ;;  %v941_v15 = vmul.f32 0.5, %v2751_v8  ;;  %v980_v9 = vld [vmem:[%s2828_s24 + $0x8] sm:$0xff] }
 0x219   : > { %v2003_v16 = vpop.f32.mrf.mxu1  ;;  %1395 = vmatpush1.bf16.msra.mxu0 %v2136_v0 }
 0x21a   : > { %2201 = vpow2.f32 %v957_v12  ;;  %923 = vst [vmem:[%s2698_s15 + $0x40] sm:$0xff] %v2757_v13  ;;  %v939_v17 = vmul.f32 0.5, %v2757_v13  ;;  %v2765_v18 = vadd.f32 %v2003_v16, %v2691_v36  ;;  %v967_v22 = vmul.f32 1.442695, %v941_v15 }
 0x21b   : > { %v887_v19 = vpop.f32.mrf.mxu1  ;;  %2203 = vpow2.f32 %v961_v14 }
 0x21c   : > { %v963_v20 = vmul.f32 1.442695, %v939_v17  ;;  %926 = vst [vmem:[%s2698_s15 + $0x58] sm:$0xff] %v2765_v18  ;;  %v2770_v21 = vadd.f32 %v2691_v36, %v887_v19  ;;  %v942_v23 = vmul.f32 0.5, %v2765_v18 }
 0x21d   : > { %v2006_v24 = vpop.f32.mrf.mxu1 }
 0x21e   : > { %2205 = vpow2.f32 %v963_v20  ;;  %924 = vst [vmem:[%s2698_s15 + $0x48] sm:$0xff] %v2770_v21  ;;  %v940_v25 = vmul.f32 0.5, %v2770_v21  ;;  %v2777_v26 = vadd.f32 %v2006_v24, %v2691_v36  ;;  %v969_v31 = vmul.f32 1.442695, %v942_v23 }
 0x21f   : > { %v900_v27 = vpop.f32.mrf.mxu1  ;;  %2207 = vpow2.f32 %v967_v22 }
 0x220   : > { %v965_v28 = vmul.f32 1.442695, %v940_v25  ;;  %929 = vst [vmem:[%s2698_s15 + $0x70] sm:$0xff] %v2777_v26  ;;  %v945_v29 = vmul.f32 0.5, %v2777_v26  ;;  %v2783_v30 = vadd.f32 %v2691_v36, %v900_v27  ;;  %v983_v25 = vld [vmem:[%s2828_s24 + $0x20] sm:$0xff] }
 0x221   : > { %v2007_v11 = vpop.f32.mrf.mxu1 }
 0x222   : > { %2209 = vpow2.f32 %v965_v28  ;;  %927 = vst [vmem:[%s2698_s15 + $0x60] sm:$0xff] %v2783_v30  ;;  %v943_v32 = vmul.f32 0.5, %v2783_v30  ;;  %v2789_v33 = vadd.f32 %v2007_v11, %v2691_v36  ;;  %v975_v37 = vmul.f32 1.442695, %v945_v29  ;;  %v984_v28 = vld [vmem:[%s2828_s24 + $0x28] sm:$0xff] }
 0x223   : > { %v2198_v34 = vpop.eup %2197  ;;  %v903_v35 = vpop.f32.mrf.mxu1  ;;  %2211 = vpow2.f32 %v969_v31 }
 0x224   : > { %v971_v39 = vmul.f32 1.442695, %v943_v32  ;;  %930 = vst [vmem:[%s2698_s15 + $0x78] sm:$0xff] %v2789_v33  ;;  %v946_v40 = vmul.f32 0.5, %v2789_v33  ;;  %v2795_v42 = vadd.f32 %v2691_v36, %v903_v35  ;;  %1019 = vrot.lane.b32.xlu0 %v2198_v34, %s2380_s19  ;;  %v2200_v43 = vpop.eup %2199 }
 0x226   : > { %2213 = vpow2.f32 %v971_v39  ;;  %928 = vst [vmem:[%s2698_s15 + $0x68] sm:$0xff] %v2795_v42  ;;  %v944_v44 = vmul.f32 0.5, %v2795_v42  ;;  %v977_v47 = vmul.f32 1.442695, %v946_v40 }
 0x227   : > { %v2202_v46 = vpop.eup %2201  ;;  %2215 = vpow2.f32 %v975_v37  ;;  %v987_v37 = vld [vmem:[%s2828_s24 + $0x40] sm:$0xff] }
 0x228   : > { %v973_v48 = vmul.f32 1.442695, %v944_v44  ;;  %1021 = vrot.lane.b32.xlu1 %v2202_v46, %s2380_s19  ;;  %1023 = vrot.lane.b32.xlu0 %v2200_v43, %s2380_s19  ;;  %v2204_v50 = vpop.eup %2203  ;;  %v988_v44 = vld [vmem:[%s2828_s24 + $0x48] sm:$0xff] }
 0x22a   : > { %2217 = vpow2.f32 %v973_v48 }
 0x22b   : > { %v2206_v36 = vpop.eup %2205  ;;  %2219 = vpow2.f32 %v977_v47 }
 0x22c   : > { %1025 = vrot.lane.b32.xlu1 %v2204_v50, %s2380_s19  ;;  %1027 = vrot.lane.b32.xlu0 %v2206_v36, %s2380_s19  ;;  %v2208_v51 = vpop.eup %2207  ;;  %v989_v50 = vld [vmem:[%s2828_s24 + $0x50] sm:$0xff] }
 0x22f   : > { %v2210_v52 = vpop.eup %2209 }
 0x230   : > { %1029 = vrot.lane.b32.xlu1 %v2210_v52, %s2380_s19  ;;  %1031 = vrot.lane.b32.xlu0 %v2208_v51, %s2380_s19  ;;  %v2212_v53 = vpop.eup %2211  ;;  %v990_v52 = vld [vmem:[%s2828_s24 + $0x58] sm:$0xff] }
 0x233   : > { %v2214_v54 = vpop.eup %2213 }
 0x234   : > { %1033 = vrot.lane.b32.xlu1 %v2212_v53, %s2380_s19  ;;  %1035 = vrot.lane.b32.xlu0 %v2214_v54, %s2380_s19  ;;  %v2216_v56 = vpop.eup %2215 }
 0x237   : > { %v2218_v61 = vpop.eup %2217 }
 0x238   : > { %1037 = vrot.lane.b32.xlu1 %v2218_v61, %s2380_s19  ;;  %1039 = vrot.lane.b32.xlu0 %v2216_v56, %s2380_s19  ;;  %v2220_v63 = vpop.eup %2219  ;;  %v992_v61 = vld [vmem:[%s2828_s24 + $0x68] sm:$0xff] }
 0x23c   : > { %1041 = vrot.lane.b32.xlu1 %v2220_v63, %s2380_s19  ;;  %s2382_s19 = smov [#allocation6]  }
 0x23d   : > { %s2285_s25 = sshll.u32 %s2382_s19, 4  ;;  %s2286_s25 = int_to_ptr.vmem [resolvable:$false] %s2285_s25 }
 0x23e   : > { %s2287_s12 = scalar_lea.vmem %s2286_s25, 4096  ;;  %p2288_p7 = scmp.lt.s32.totalorder %s2944_s26, %s2286_s25 }
 0x284   : > { %v1016_v1 = vpop.permute.xlu1 %1015 }
 0x285   : > { %v1061_v14 = vmul.f32 %v1016_v1, %v981_v6  ;;  %v994_v6 = vld [vmem:[%s2828_s24 + $0x78] sm:$0xff] }
 0x286   : > { %v1012_v4 = vpop.permute.xlu0 %1011 }
 0x287   : > { %v1059_v10 = vmul.f32 %v1012_v4, %v979_v3  ;;  %v1077_v22 = vadd.f32 %v1061_v14, %v2694_v38  ;;  %v993_v3 = vld [vmem:[%s2828_s24 + $0x70] sm:$0xff] }
 0x288   : > { %v1018_v7 = vpop.permute.xlu1 %1017 }
 0x289   : > { %v1062_v12 = vmul.f32 %v1018_v7, %v982_v5  ;;  %v1075_v19 = vadd.f32 %v1059_v10, %v2704_v41  ;;  %v985_v41 = vld [vmem:[%s2828_s24 + $0x30] sm:$0xff] }
 0x28a   : > { %v1014_v15 = vpop.permute.xlu0 %1013 }
 0x28b   : > { %v1060_v16 = vmul.f32 %v1014_v15, %v980_v9  ;;  %v1078_v17 = vadd.f32 %v1062_v12, %v2710_v45 }
 0x28d   : > { %v1076_v20 = vadd.f32 %v1060_v16, %v2716_v49  ;;  %v1092_v24 = vpack.c.bf16 %v1078_v17, %v1077_v22  ;;  %v986_v49 = vld [vmem:[%s2828_s24 + $0x38] sm:$0xff]  ;;  %v2148_v22 = vld [vmem:[%s3091_s8 + $0x20] ss:$8 sps:$4 sm:$0xff]  }
 0x28e   : > { %v2147_v17 = vld [vmem:[%s3091_s8 + $0x34] ss:$8 sps:$4 sm:$0xff]  }
 0x28f   : > { %v1091_v23 = vpack.c.bf16 %v1076_v20, %v1075_v19  ;;  %v2145_v19 = vld [vmem:[%s3091_s8 + $0x30] ss:$8 sps:$4 sm:$0xff]   ;;  %v2150_v20 = vld [vmem:[%s3091_s8 + $0x24] ss:$8 sps:$4 sm:$0xff]  }
 0x291   : > { %2016 = vmatprep.mubr.msk.bf16.mxu1 %vm1138_vm0, %v1091_v23  ;;  %v2153_v23 = vld [vmem:[%s3091_s8 + $0x14] ss:$8 sps:$4 sm:$0xff]  }
 0x292   : > { %2017 = vmatmul.mubr.msk.bf16.vlgmr.msra.gmra.mxu1 %vm1138_vm0, %v1092_v24  ;;  %v2151_v24 = vld [vmem:[%s3091_s8 + $0x10] ss:$8 sps:$4 sm:$0xff]  }
 0x296   : > { %v1020_v27 = vpop.permute.xlu0 %1019 }
 0x297   : > { %v1063_v45 = vmul.f32 %v1020_v27, %v983_v25  ;;  %v2156_v25 = vld [vmem:[%s3091_s8 + $0x4] ss:$8 sps:$4 sm:$0xff]   ;;  %v2154_v27 = vld [vmem:[%s3091_s8] ss:$8 sps:$4 sm:$0xff]  }
 0x299   : > { %v1079_v38 = vadd.f32 %v1063_v45, %v2730_v57 }
 0x29a   : > { %v1022_v29 = vpop.permute.xlu1 %1021  ;;  %v1024_v31 = vpop.permute.xlu0 %1023 }
 0x29b   : > { %v1064_v11 = vmul.f32 %v1022_v29, %v984_v28  ;;  %v1065_v34 = vmul.f32 %v1024_v31, %v985_v41  ;;  %v2381_v28 = vmov 0   ;;  %v2910_v41 = vld [vmem:[%s3090_s7] ss:$0 sm:$0xff] }
 0x29c   : > { %1424 = vmatprep.mubr.bf16.mxu0 %v2381_v28 }
 0x29d   : > { %v1080_v32 = vadd.f32 %v1064_v11, %v2743_v2  ;;  %v1081_v46 = vadd.f32 %v1065_v34, %v2725_v55 }
 0x29e   : > { %v1026_v35 = vpop.permute.xlu1 %1025  ;;  %v1028_v39 = vpop.permute.xlu0 %1027 }
 0x29f   : > { %v1093_v40 = vpack.c.bf16 %v1080_v32, %v1079_v38  ;;  %v1066_v43 = vmul.f32 %v1026_v35, %v986_v49  ;;  %v1067_v48 = vmul.f32 %v1028_v39, %v987_v37 }
 0x2a1   : > { %v1082_v47 = vadd.f32 %v1066_v43, %v2737_v62  ;;  %2020 = vmatprep.mubr.msk.bf16.mxu1 %vm1138_vm0, %v1093_v40  ;;  %v1083_v53 = vadd.f32 %v1067_v48, %v2757_v13  ;;  %v991_v62 = vld [vmem:[%s2828_s24 + $0x60] sm:$0xff]  ;;  %s2281_s24 = scalar_lea.vmem %s2944_s26, 2048 }
 0x2a2   : > { %v1030_v57 = vpop.permute.xlu1 %1029  ;;  %v1032_v2 = vpop.permute.xlu0 %1031  ;;  %p2282_p12 = scmp.ne.s32.totalorder %s2944_s26, %s2281_s24  ;;  %p2289_p8 = scmp.lt.s32.totalorder %s2287_s12, %s2281_s24 }
 0x2a3   : > { %v1094_v36 = vpack.c.bf16 %v1082_v47, %v1081_v46  ;;  %v1068_v51 = vmul.f32 %v1030_v57, %v988_v44  ;;  %v1069_v56 = vmul.f32 %v1032_v2, %v989_v50 }
 0x2a4   : > { %p2283_p4 = pnand %p2282_p12, %p3112_p13  ;;  %p2290_p10 = por %p2289_p8, %p2288_p7 }
 0x2a5   : > { %v1084_v54 = vadd.f32 %v1068_v51, %v2770_v21  ;;  %2021 = vmatmul.mubr.msk.bf16.gmra.mxu1 %vm1138_vm0, %v1094_v36  ;;  %v1085_v63 = vadd.f32 %v1069_v56, %v2751_v8 }
 0x2a6   : > { %v1034_v55 = vpop.permute.xlu1 %1033  ;;  %v1036_v58 = vpop.permute.xlu0 %1035  ;;  %p2284_p5 = pneg %p2283_p4 }
 0x2a7   : > { %v1095_v59 = vpack.c.bf16 %v1084_v54, %v1083_v53  ;;  %v1070_v60 = vmul.f32 %v1034_v55, %v990_v52  ;;  %v1071_v1 = vmul.f32 %v1036_v58, %v991_v62 }
 0x2a8   : > { %p2291_p0 = pnand %p2290_p10, %p2284_p5 }
 0x2a9   : > { %v1086_v0 = vadd.f32 %v1070_v60, %v2765_v18  ;;  %2024 = vmatprep.mubr.msk.bf16.mxu1 %vm1138_vm0, %v1095_v59  ;;  %v1087_v7 = vadd.f32 %v1071_v1, %v2783_v30  ;;  %v2141_v30 = vld [vmem:[%s3091_s8 + $0x54] ss:$8 sps:$4 sm:$0xff]  }
 0x2aa   : > { %v1038_v13 = vpop.permute.xlu1 %1037  ;;  %v1040_v21 = vpop.permute.xlu0 %1039  ;;  %1396 = vmatprep.subr.bf16.mxu0 %v2141_v30 }
 0x2ab   : > { %v1096_v4 = vpack.c.bf16 %v1086_v0, %v1085_v63  ;;  %v1072_v5 = vmul.f32 %v1038_v13, %v992_v61  ;;  %v1073_v10 = vmul.f32 %v1040_v21, %v993_v3 }
 0x2ad   : > { %v1088_v9 = vadd.f32 %v1072_v5, %v2795_v42  ;;  %2025 = vmatmul.mubr.msk.bf16.gmra.mxu1 %vm1138_vm0, %v1096_v4  ;;  %v1089_v18 = vadd.f32 %v1073_v10, %v2777_v26  ;;  %v2139_v42 = vld [vmem:[%s3091_s8 + $0x50] ss:$8 sps:$4 sm:$0xff]   ;;  %v2144_v26 = vld [vmem:[%s3091_s8 + $0x44] ss:$8 sps:$4 sm:$0xff]  }
 0x2ae   : > { %v1042_v12 = vpop.permute.xlu1 %1041  ;;  %1397 = vmatpush1.bf16.msra.mxu0 %v2139_v42 }
 0x2af   : > { %v1097_v8 = vpack.c.bf16 %v1088_v9, %v1087_v7  ;;  %v1074_v14 = vmul.f32 %v1042_v12, %v994_v6  ;;  %1398 = vmatprep.subr.bf16.mxu0 %v2144_v26 }
 0x2b1   : > { %v1090_v15 = vadd.f32 %v1074_v14, %v2789_v33  ;;  %2028 = vmatprep.mubr.msk.bf16.mxu1 %vm1138_vm0, %v1097_v8  ;;  %v2142_v33 = vld [vmem:[%s3091_s8 + $0x40] ss:$8 sps:$4 sm:$0xff]  }
 0x2b2   : > { %1399 = vmatpush1.bf16.msra.mxu0 %v2142_v33 }
 0x2b3   : > { %v1098_v16 = vpack.c.bf16 %v1090_v15, %v1089_v18  ;;  %1400 = vmatprep.subr.bf16.mxu0 %v2147_v17 }
 0x2b5   : > { %2029 = vmatmul.mubr.msk.bf16.gmra.mxu1 %vm1138_vm0, %v1098_v16 }
 0x2b6   : > { %1401 = vmatpush1.bf16.msra.mxu0 %v2145_v19 }
 0x2b7   : > { %1402 = vmatprep.subr.bf16.mxu0 %v2150_v20 }
 0x2ba   : > { %1403 = vmatpush1.bf16.msra.mxu0 %v2148_v22 }
 0x2bb   : > { %1404 = vmatprep.subr.bf16.mxu0 %v2153_v23 }
 0x2be   : > { %1405 = vmatpush1.bf16.msra.mxu0 %v2151_v24 }
 0x2bf   : > { %1406 = vmatprep.subr.bf16.mxu0 %v2156_v25 }
 0x2c2   : > { %1407 = vmatpush1.bf16.msra.mxu0 %v2154_v27 }
 0x352   : > { %v2018_v45 = vpop.f32.mrf.mxu1 }
 0x353   : > { %v1206_v34 = vadd.f32 %v2018_v45, %v2910_v41 }
 0x354   : > { %v1197_v29 = vpop.f32.mrf.mxu1 }
 0x355   : > { %v1198_v31 = vadd.f32 %v2910_v41, %v1197_v29 }
 0x356   : > { %v2019_v11 = vpop.f32.mrf.mxu1 }
 0x357   : > { %2221 = vtanh.f32 %v1198_v31  ;;  %v1209_v32 = vadd.f32 %v2019_v11, %v2910_v41 }
 0x358   : > { %v1200_v49 = vpop.f32.mrf.mxu1 }
 0x359   : > { %v1201_v38 = vadd.f32 %v2910_v41, %v1200_v49 }
 0x35b   : > { %2223 = vtanh.f32 %v1201_v38 }
 0x35c   : > { %2225 = vtanh.f32 %v1209_v32 }
 0x35d   : > { %2227 = vtanh.f32 %v1206_v34 }
 0x364   : > { %v2222_v37 = vpop.eup %2221 }
 0x365   : > { %v2022_v35 = vpop.f32.mrf.mxu1 }
 0x366   : > { %v1222_v54 = vadd.f32 %v2022_v35, %v2910_v41 }
 0x367   : > { %v1213_v39 = vpop.f32.mrf.mxu1 }
 0x368   : > { %v2224_v40 = vpop.eup %2223  ;;  %v1214_v43 = vadd.f32 %v2910_v41, %v1213_v39 }
 0x369   : > { %v2023_v44 = vpop.f32.mrf.mxu1  ;;  %v1276_v46 = vpack.c.bf16 %v2224_v40, %v2222_v37  ;;  %v2226_v50 = vpop.eup %2225 }
 0x36a   : > { %2229 = vtanh.f32 %v1214_v43  ;;  %v2228_v36 = vpop.eup %2227  ;;  %v1225_v51 = vadd.f32 %v2023_v44, %v2910_v41 }
 0x36b   : > { %v1216_v47 = vpop.f32.mrf.mxu1  ;;  %1425 = vmatmul.mubr.bf16.vlgmr.msra.gmra.mxu0 %v1276_v46  ;;  %v1277_v53 = vpack.c.bf16 %v2226_v50, %v2228_v36 }
 0x36c   : > { %v1217_v48 = vadd.f32 %v2910_v41, %v1216_v47  ;;  %1434 = vmatprep.mubr.bf16.mxu0 %v2381_v28 }
 0x36d   : > { %v2026_v57 = vpop.f32.mrf.mxu1 }
 0x36e   : > { %2231 = vtanh.f32 %v1217_v48  ;;  %v1238_v3 = vadd.f32 %v2026_v57, %v2910_v41 }
 0x36f   : > { %v1229_v2 = vpop.f32.mrf.mxu1  ;;  %2233 = vtanh.f32 %v1225_v51 }
 0x370   : > { %2235 = vtanh.f32 %v1222_v54  ;;  %v1230_v59 = vadd.f32 %v2910_v41, %v1229_v2 }
 0x371   : > { %v2027_v52 = vpop.f32.mrf.mxu1 }
 0x372   : > { %v1241_v0 = vadd.f32 %v2027_v52, %v2910_v41 }
 0x373   : > { %1435 = vmatmul.mubr.bf16.gmra.mxu0 %v1277_v53  ;;  %v1232_v56 = vpop.f32.mrf.mxu1 }
 0x374   : > { %1444 = vmatprep.mubr.bf16.mxu0 %v2381_v28  ;;  %v1233_v55 = vadd.f32 %v2910_v41, %v1232_v56 }
 0x375   : > { %v2030_v62 = vpop.f32.mrf.mxu1 }
 0x376   : > { %2237 = vtanh.f32 %v1233_v55  ;;  %v1254_v18 = vadd.f32 %v2030_v62, %v2910_v41 }
 0x377   : > { %v2230_v58 = vpop.eup %2229  ;;  %v1245_v63 = vpop.f32.mrf.mxu1  ;;  %2239 = vtanh.f32 %v1230_v59 }
 0x378   : > { %2241 = vtanh.f32 %v1241_v0  ;;  %v1246_v9 = vadd.f32 %v2910_v41, %v1245_v63 }
 0x379   : > { %v2031_v13 = vpop.f32.mrf.mxu1  ;;  %2243 = vtanh.f32 %v1238_v3 }
 0x37a   : > { %v1257_v8 = vadd.f32 %v2031_v13, %v2910_v41 }
 0x37b   : > { %v2232_v60 = vpop.eup %2231  ;;  %v1248_v5 = vpop.f32.mrf.mxu1 }
 0x37c   : > { %v1278_v61 = vpack.c.bf16 %v2232_v60, %v2230_v58  ;;  %v2234_v1 = vpop.eup %2233  ;;  %v1249_v6 = vadd.f32 %v2910_v41, %v1248_v5 }
 0x37d   : > { %v2236_v21 = vpop.eup %2235 }
 0x37e   : > { %1445 = vmatmul.mubr.bf16.gmra.mxu0 %v1278_v61  ;;  %v1279_v4 = vpack.c.bf16 %v2234_v1, %v2236_v21  ;;  %2245 = vtanh.f32 %v1249_v6 }
 0x37f   : > { %1454 = vmatprep.mubr.bf16.mxu0 %v2381_v28  ;;  %2247 = vtanh.f32 %v1246_v9 }
 0x380   : > { %2249 = vtanh.f32 %v1257_v8 }
 0x381   : > { %2251 = vtanh.f32 %v1254_v18 }
 0x383   : > { %v2238_v7 = vpop.eup %2237 }
 0x384   : > { %v2240_v10 = vpop.eup %2239 }
 0x385   : > { %v1280_v12 = vpack.c.bf16 %v2238_v7, %v2240_v10  ;;  %v2242_v14 = vpop.eup %2241 }
 0x386   : > { %1455 = vmatmul.mubr.bf16.gmra.mxu0 %v1279_v4  ;;  %v2244_v15 = vpop.eup %2243 }
 0x387   : > { %1464 = vmatprep.mubr.bf16.mxu0 %v2381_v28  ;;  %v1281_v16 = vpack.c.bf16 %v2242_v14, %v2244_v15 }
 0x38b   : > { %v2246_v30 = vpop.eup %2245 }
 0x38c   : > { %v2248_v42 = vpop.eup %2247 }
 0x38d   : > { %v1282_v26 = vpack.c.bf16 %v2246_v30, %v2248_v42  ;;  %v2250_v33 = vpop.eup %2249 }
 0x38e   : > { %1465 = vmatmul.mubr.bf16.gmra.mxu0 %v1280_v12  ;;  %v2252_v17 = vpop.eup %2251 }
 0x38f   : > { %1474 = vmatprep.mubr.bf16.mxu0 %v2381_v28  ;;  %v1283_v19 = vpack.c.bf16 %v2250_v33, %v2252_v17 }
 0x396   : > { %1475 = vmatmul.mubr.bf16.gmra.mxu0 %v1281_v16 }
 0x397   : > { %1484 = vmatprep.mubr.bf16.mxu0 %v2381_v28 }
 0x39e   : > { %1485 = vmatmul.mubr.bf16.gmra.mxu0 %v1282_v26 }
 0x39f   : > { %1494 = vmatprep.mubr.bf16.mxu0 %v2381_v28 }
 0x3a6   : > { %1495 = vmatmul.mubr.bf16.gmra.mxu0 %v1283_v19 }
 0x3a7   : > { %2294 = shalt.err (!%p2291_p0)
}
 0x3a8   : > { %s2295_s15 = scalar_lea.hbm %s2941_s27, 2048  ;;  %s2299_s14 = scalar_lea.hbm %s3094_s11, 4096 }
 0x3a9   : > { %p2296_p2 = scmp.ne.s32.totalorder %s2941_s27, %s2295_s15  ;;  %p2300_p3 = scmp.lt.s32.totalorder %s2941_s27, %s3094_s11 }
 0x3aa   : > { %p2301_p6 = scmp.lt.s32.totalorder %s2299_s14, %s2295_s15 }
 0x3ab   : > { %p2297_p9 = pnand %p2296_p2, %p3112_p13 }
 0x3ac   : > { %p2302_p11 = por %p2301_p6, %p2300_p3 }
 0x3ad   : > { %p2298_p1 = pneg %p2297_p9 }
 0x3af   : > { %p2303_p12 = pnand %p2302_p11, %p2298_p1 }
 0x3b1   : > { %2306 = shalt.err (!%p2303_p12)
}
 0x3b2   : > { %s2383_s24 = smov 128   ;;  %s2384_s25 = smov 8   ;;  %v1302_v20 = vlaneseq  ;;  %v1300_v25 = vld [vmem:[%s3092_s9] sm:$0x3] }
 0x3b3   : > { %2051 = dma.vmem_to_hbm [thread:$0]  (%p3112_p13), %s2944_s26, 2048, %s2941_s27, %s1623_s16, %s2383_s24, %s2383_s24, %s2384_s25  }
 0x3b4   : > { %v1303_v22 = vshrl.u32 %v1302_v20, 7  ;;  %s2983_s27 = scalar_lea.vmem [#allocation5], %s1779_s13  ;;  %s3113_s26 = sshll.u32 %s2467_s21, 11 }
 0x3b5   : > { %s1637_s13 = sshll.u32 %s2983_s27, 4  ;;  %s3036_s22 = scalar_lea.hbm %s3093_s10, %s3113_s26  ;;  %s3038_s13 = int_to_ptr.vmem [resolvable:$true] %s1637_s13 }
 0x3b6   : > { %v1304_v23 = vsub.s32 0, %v1303_v22  ;;  %v1308_v24 = vsub.s32 1, %v1303_v22  ;;  %s1618_s28 = scalar_lea.sflag [#allocation4], %s2543_s30  ;;  %s2307_s14 = scalar_lea.vmem %s3038_s13, 2048 }
 0x3b7   : > { %p2308_p4 = scmp.ne.s32.totalorder %s3038_s13, %s2307_s14  ;;  %s2385_s19 = smov [#allocation5]  }
 0x3b8   : > { %v2975_v27 = vrot.slane %v1300_v25, %v1304_v23  ;;  %v2977_v28 = vrot.slane %v1300_v25, %v1308_v24  ;;  %s2311_s23 = sshll.u32 %s2385_s19, 4  ;;  %s2312_s23 = int_to_ptr.vmem [resolvable:$false] %s2311_s23 }
 0x3b9   : > { %p2309_p5 = pnand %p2308_p4, %p3112_p13  ;;  %s2313_s21 = scalar_lea.vmem %s2312_s23, 4096 }
 0x3ba   : > { %p2314_p8 = scmp.lt.s32.totalorder %s3038_s13, %s2312_s23  ;;  %p2315_p10 = scmp.lt.s32.totalorder %s2313_s21, %s2307_s14 }
 0x3bb   : > { %p2310_p7 = pneg %p2309_p5 }
 0x3bc   : > { %p2316_p0 = por %p2315_p10, %p2314_p8 }
 0x3be   : > { %p2317_p2 = pnand %p2316_p0, %p2310_p7 }
 0x42b   : > { %v1426_v45 = vpop.f32.mrf.mxu0 }
 0x42c   : > { %v1427_v41 = vadd.f32 %v1426_v45, %v2975_v27 }
 0x42d   : > { %v1428_v29 = vpop.f32.mrf.mxu0 }
 0x42e   : > { %v1429_v31 = vadd.f32 %v1428_v29, %v2977_v28 }
 0x42f   : > { %v1430_v11 = vpop.f32.mrf.mxu0 }
 0x430   : > { %v1865_v49 = vpack.c.bf16 %v1429_v31, %v1427_v41  ;;  %v1431_v32 = vadd.f32 %v1430_v11, %v2975_v27 }
 0x431   : > { %v1432_v38 = vpop.f32.mrf.mxu0 }
 0x432   : > { %1601 = vst [vmem:[%s2983_s27] sm:$0xff] %v1865_v49  ;;  %v1433_v34 = vadd.f32 %v1432_v38, %v2977_v28 }
 0x433   : > { %v1436_v35 = vpop.f32.mrf.mxu0 }
 0x434   : > { %v1866_v37 = vpack.c.bf16 %v1433_v34, %v1431_v32  ;;  %v1437_v40 = vadd.f32 %v1436_v35, %v2975_v27 }
 0x435   : > { %v1438_v39 = vpop.f32.mrf.mxu0 }
 0x436   : > { %1602 = vst [vmem:[%s2983_s27 + $0x8] sm:$0xff] %v1866_v37  ;;  %v1439_v43 = vadd.f32 %v1438_v39, %v2977_v28 }
 0x437   : > { %v1440_v44 = vpop.f32.mrf.mxu0 }
 0x438   : > { %v1867_v46 = vpack.c.bf16 %v1439_v43, %v1437_v40  ;;  %v1441_v48 = vadd.f32 %v1440_v44, %v2975_v27 }
 0x439   : > { %v1442_v47 = vpop.f32.mrf.mxu0 }
 0x43a   : > { %1603 = vst [vmem:[%s2983_s27 + $0x10] sm:$0xff] %v1867_v46  ;;  %v1443_v57 = vadd.f32 %v1442_v47, %v2977_v28 }
 0x43c   : > { %v1868_v50 = vpack.c.bf16 %v1443_v57, %v1441_v48 }
 0x43e   : > { %1604 = vst [vmem:[%s2983_s27 + $0x18] sm:$0xff] %v1868_v50  ;;  %v1446_v2 = vpop.f32.mrf.mxu0 }
 0x43f   : > { %v1447_v51 = vadd.f32 %v1446_v2, %v2975_v27 }
 0x440   : > { %v1448_v36 = vpop.f32.mrf.mxu0 }
 0x441   : > { %v1449_v52 = vadd.f32 %v1448_v36, %v2977_v28 }
 0x442   : > { %v1450_v53 = vpop.f32.mrf.mxu0 }
 0x443   : > { %v1869_v54 = vpack.c.bf16 %v1449_v52, %v1447_v51  ;;  %v1451_v55 = vadd.f32 %v1450_v53, %v2975_v27 }
 0x444   : > { %v1452_v56 = vpop.f32.mrf.mxu0 }
 0x445   : > { %1605 = vst [vmem:[%s2983_s27 + $0x20] sm:$0xff] %v1869_v54  ;;  %v1453_v62 = vadd.f32 %v1452_v56, %v2977_v28 }
 0x446   : > { %v1456_v58 = vpop.f32.mrf.mxu0 }
 0x447   : > { %v1870_v59 = vpack.c.bf16 %v1453_v62, %v1451_v55  ;;  %v1457_v61 = vadd.f32 %v1456_v58, %v2975_v27 }
 0x448   : > { %v1458_v60 = vpop.f32.mrf.mxu0 }
 0x449   : > { %1606 = vst [vmem:[%s2983_s27 + $0x28] sm:$0xff] %v1870_v59  ;;  %v1459_v63 = vadd.f32 %v1458_v60, %v2977_v28 }
 0x44a   : > { %v1460_v0 = vpop.f32.mrf.mxu0 }
 0x44b   : > { %v1871_v1 = vpack.c.bf16 %v1459_v63, %v1457_v61  ;;  %v1461_v3 = vadd.f32 %v1460_v0, %v2975_v27 }
 0x44c   : > { %v1462_v13 = vpop.f32.mrf.mxu0 }
 0x44d   : > { %1607 = vst [vmem:[%s2983_s27 + $0x30] sm:$0xff] %v1871_v1  ;;  %v1463_v21 = vadd.f32 %v1462_v13, %v2977_v28 }
 0x44e   : > { %v1466_v4 = vpop.f32.mrf.mxu0 }
 0x44f   : > { %v1872_v5 = vpack.c.bf16 %v1463_v21, %v1461_v3  ;;  %v1467_v7 = vadd.f32 %v1466_v4, %v2975_v27 }
 0x450   : > { %v1468_v6 = vpop.f32.mrf.mxu0 }
 0x451   : > { %1608 = vst [vmem:[%s2983_s27 + $0x38] sm:$0xff] %v1872_v5  ;;  %v1469_v9 = vadd.f32 %v1468_v6, %v2977_v28 }
 0x452   : > { %v1470_v10 = vpop.f32.mrf.mxu0 }
 0x453   : > { %v1873_v12 = vpack.c.bf16 %v1469_v9, %v1467_v7  ;;  %v1471_v14 = vadd.f32 %v1470_v10, %v2975_v27 }
 0x454   : > { %v1472_v8 = vpop.f32.mrf.mxu0 }
 0x455   : > { %1609 = vst [vmem:[%s2983_s27 + $0x40] sm:$0xff] %v1873_v12  ;;  %v1473_v18 = vadd.f32 %v1472_v8, %v2977_v28 }
 0x456   : > { %v1476_v15 = vpop.f32.mrf.mxu0 }
 0x457   : > { %v1874_v16 = vpack.c.bf16 %v1473_v18, %v1471_v14  ;;  %v1477_v42 = vadd.f32 %v1476_v15, %v2975_v27 }
 0x458   : > { %v1478_v30 = vpop.f32.mrf.mxu0 }
 0x459   : > { %1610 = vst [vmem:[%s2983_s27 + $0x48] sm:$0xff] %v1874_v16  ;;  %v1479_v26 = vadd.f32 %v1478_v30, %v2977_v28 }
 0x45a   : > { %v1480_v33 = vpop.f32.mrf.mxu0 }
 0x45b   : > { %v1875_v17 = vpack.c.bf16 %v1479_v26, %v1477_v42  ;;  %v1481_v20 = vadd.f32 %v1480_v33, %v2975_v27 }
 0x45c   : > { %v1482_v19 = vpop.f32.mrf.mxu0 }
 0x45d   : > { %1611 = vst [vmem:[%s2983_s27 + $0x50] sm:$0xff] %v1875_v17  ;;  %v1483_v22 = vadd.f32 %v1482_v19, %v2977_v28 }
 0x45e   : > { %v1486_v23 = vpop.f32.mrf.mxu0 }
 0x45f   : > { %v1876_v24 = vpack.c.bf16 %v1483_v22, %v1481_v20  ;;  %v1487_v45 = vadd.f32 %v1486_v23, %v2975_v27 }
 0x460   : > { %v1488_v25 = vpop.f32.mrf.mxu0 }
 0x461   : > { %1612 = vst [vmem:[%s2983_s27 + $0x58] sm:$0xff] %v1876_v24  ;;  %v1489_v29 = vadd.f32 %v1488_v25, %v2977_v28 }
 0x462   : > { %v1490_v41 = vpop.f32.mrf.mxu0 }
 0x463   : > { %v1877_v31 = vpack.c.bf16 %v1489_v29, %v1487_v45  ;;  %v1491_v49 = vadd.f32 %v1490_v41, %v2975_v27 }
 0x464   : > { %v1492_v11 = vpop.f32.mrf.mxu0 }
 0x465   : > { %1613 = vst [vmem:[%s2983_s27 + $0x60] sm:$0xff] %v1877_v31  ;;  %v1493_v38 = vadd.f32 %v1492_v11, %v2977_v28 }
 0x466   : > { %v1496_v32 = vpop.f32.mrf.mxu0 }
 0x467   : > { %v1878_v34 = vpack.c.bf16 %v1493_v38, %v1491_v49  ;;  %v1497_v37 = vadd.f32 %v1496_v32, %v2975_v27 }
 0x468   : > { %v1498_v35 = vpop.f32.mrf.mxu0 }
 0x469   : > { %1614 = vst [vmem:[%s2983_s27 + $0x68] sm:$0xff] %v1878_v34  ;;  %v1499_v39 = vadd.f32 %v1498_v35, %v2977_v28 }
 0x46a   : > { %v1500_v40 = vpop.f32.mrf.mxu0 }
 0x46b   : > { %v1879_v43 = vpack.c.bf16 %v1499_v39, %v1497_v37  ;;  %v1501_v46 = vadd.f32 %v1500_v40, %v2975_v27 }
 0x46c   : > { %v1502_v44 = vpop.f32.mrf.mxu0 }
 0x46d   : > { %1615 = vst [vmem:[%s2983_s27 + $0x70] sm:$0xff] %v1879_v43  ;;  %v1503_v47 = vadd.f32 %v1502_v44, %v2977_v28 }
 0x46f   : > { %v1880_v48 = vpack.c.bf16 %v1503_v47, %v1501_v46 }
 0x471   : > { %1616 = vst [vmem:[%s2983_s27 + $0x78] sm:$0xff] %v1880_v48 }
 0x472   : > { %2320 = shalt.err (!%p2317_p2)
}
 0x473   : > { %s2321_s12 = scalar_lea.hbm %s3036_s22, 2048  ;;  %s2325_s26 = scalar_lea.hbm %s3093_s10, 4096 }
 0x474   : > { %p2322_p9 = scmp.ne.s32.totalorder %s3036_s22, %s2321_s12  ;;  %p2326_p6 = scmp.lt.s32.totalorder %s3036_s22, %s3093_s10 }
 0x475   : > { %p2327_p11 = scmp.lt.s32.totalorder %s2325_s26, %s2321_s12 }
 0x476   : > { %p2323_p1 = pnand %p2322_p9, %p3112_p13 }
 0x477   : > { %p2328_p12 = por %p2327_p11, %p2326_p6 }
 0x478   : > { %p2324_p3 = pneg %p2323_p1 }
 0x47a   : > { %p2329_p4 = pnand %p2328_p12, %p2324_p3 }
 0x47c   : > { %2332 = shalt.err (!%p2329_p4)
}
 0x47d   : > { %2050 = dma.vmem_to_hbm [thread:$0]  (%p3112_p13), %s3038_s13, 2048, %s3036_s22, %s1618_s28, %s2383_s24, %s2383_s24, %s2384_s25  }
 0x47e PF: > { %s3114_s14 = sld [smem:[#allocation14_spill]]  ;;  %s1668_s19 = sand.u32 1, %s2363_s17  }
 0x47f   : > { %p3116_p7 = scmp.ge.s32.totalorder %s2375_s20, 2  ;;  %s1669_s23 = scalar_lea.sflag [#allocation4], %s1668_s19 }
 0x484   : > { %p3115_p5 = scmp.ne.s32.totalorder %s3114_s14, 0 }
 0x486   : > { %p2059_p8 = pnand %p3116_p7, %p3115_p5 }
 0x488   : > { %p2060_p10 = pneg %p2059_p8 }
 0x48a   : > { %2354 = dma.done.wait (%p2060_p10), %s1669_s23, 2048  }
 0x48b   : > { %2356 = vsyncadd (%p2060_p10), %s1669_s23, 4294965248  ;;  %s1678_s21 = scalar_lea.sflag [#allocation7], %s1668_s19 }
 0x48c   : > { %2358 = dma.done.wait (%p2060_p10), %s1678_s21, 2048  }
 0x48d   : > { %2360 = vsyncadd (%p2060_p10), %s1678_s21, 4294965248  ;;  %s3117_s20 = sld [smem:[#allocation12_spill]]  ;;  %s3120_s17 = smov %s2367_s18 }
 0x48e   : > { %s3118_s29 = sld [smem:[#allocation11_spill]] }
 0x48f   : > { %s3119_s19 = sld [smem:[#allocation13_spill]] }
 0x493   : > { %p28_p13 = scmp.ge.s32.totalorder %s3117_s20, 4  }
 0x494   : > { %s3121_s18 = smov %s3118_s29 }
 0x495   :  { %30 = sbr.rel (!%p28_p13) target bundleno = 7 (0x7), region = 125 }
 0x49a   :  { %1683 = vsyncpa [#allocation3], 1 }
 0x49b   :  { %1685 = vsyncpa [#allocation3 + $0x1], 1 }
 0x49c   :  { %1686 = vsyncpa [#allocation4], 1 }
 0x49d   :  { %1688 = vsyncpa [#allocation4 + $0x1], 1 }
 0x49e   :  { %1689 = vsyncpa [#allocation7], 1 }
 0x49f   :  { %1691 = vsyncpa [#allocation7 + $0x1], 1 }

// kernel: tpu_custom_call.1
= control target key start
LH: loop header
LB: loop body
LE: loop exit
PB: predicated region body
PF: predicated region fallthrough
CT: control target
= control target key end

     0   :  { %17 = vsyncpa [#allocation3], 0  ;;  %s3083_s0 = inlined_call_operand.hbm [shape: f32[256,256], index: 0, kind: input, shape index: {}]   ;;  %s3084_s1 = inlined_call_operand.vmem [shape: f32[256,64], index: 1, kind: input, shape index: {}]   ;;  %s3085_s2 = inlined_call_operand.vmem [shape: bf16[256,128], index: 2, kind: input, shape index: {}]   ;;  %s3086_s3 = inlined_call_operand.vmem [shape: f32[1,128], index: 3, kind: input, shape index: {}]   ;;  %s3087_s4 = inlined_call_operand.vmem [shape: bf16[128,128], index: 4, kind: input, shape index: {}]   ;;  %s3088_s5 = inlined_call_operand.vmem [shape: f32[1,128], index: 5, kind: input, shape index: {}]   ;;  %s3089_s6 = inlined_call_operand.vmem [shape: bf16[64,128], index: 6, kind: input, shape index: {}]   ;;  %s3090_s7 = inlined_call_operand.vmem [shape: f32[1,128], index: 7, kind: input, shape index: {}]   ;;  %s3091_s8 = inlined_call_operand.vmem [shape: bf16[128,256], index: 8, kind: input, shape index: {}]   ;;  %s3092_s9 = inlined_call_operand.vmem [shape: f32[1,256], index: 9, kind: input, shape index: {}]   ;;  %s3093_s10 = inlined_call_operand.hbm [shape: bf16[256,256], index: 10, kind: output, shape index: {0}]   ;;  %s3094_s11 = inlined_call_operand.hbm [shape: f32[256,128], index: 11, kind: output, shape index: {1}]  }
   0x1   :  { %19 = vsyncpa [#allocation3 + $0x1], 0 }
   0x2   :  { %20 = vsyncpa [#allocation4], 0 }
   0x3   :  { %22 = vsyncpa [#allocation4 + $0x1], 0 }
   0x4   :  { %23 = vsyncpa [#allocation7], 0 }
   0x5   :  { %25 = vsyncpa [#allocation7 + $0x1], 0  ;;  %s2446_s17 = smov 0   ;;  %s2448_s18 = smov 0  }
   0x6   :  { %s2450_s19 = smov 0   ;;  %s2452_s20 = smov 0  }
   0x7 LB: > { %3102 = sst [smem:[#allocation11_spill]] %s2371_s19  ;;  %s2467_s21 = sadd.s32 4294967295, %s2375_s20   ;;  %s2375_s20 = sphi %s2452_s20, %s3117_s20   ;;  %s2371_s19 = sphi %s2450_s19, %s3119_s19   ;;  %s2367_s18 = sphi %s2448_s18, %s3121_s18   ;;  %s2363_s17 = sphi %s2446_s17, %s3120_s17  }
   0x8   : > { %s1770_s22 = sadd.s32 4294967294, %s2375_s20   ;;  %s2471_s23 = sadd.s32 1, %s2375_s20  }
   0x9   : > { %3103 = sst [smem:[#allocation12_spill]] %s2471_s23  ;;  %s38_s24 = sadd.s32 1, %s2371_s19 }
   0xa   : > { %s35_s25 = ssub.s32 %s2375_s20, %s2471_s23  ;;  %p45_p0 = scmp.ne.s32.totalorder %s2371_s19, %s2367_s18 }
   0xb   : > { %p36_p1 = scmp.eq.s32.totalorder %s35_s25, 0  ;;  %p46_p2 = scmp.eq.s32.totalorder %s2375_s20, 0 }
   0xc   : > { %p51_p3 = scmp.ne.s32.totalorder %s2367_s18, %s2363_s17  ;;  %p52_p4 = scmp.eq.s32.totalorder %s2467_s21, 0 }
   0xd   : > { %s2483_s26 = scalar_select %p36_p1, %s2371_s19, %s38_s24  }
   0xe   : > { %p2485_p5 = por %p46_p2, %p45_p0  ;;  %p2489_p6 = por %p52_p4, %p51_p3 }
   0xf   : > { %3104 = sst [smem:[#allocation13_spill]] %s2483_s26  ;;  %p269_p7 = scmp.eq.s32.totalorder %s2467_s21, 1 }
  0x10   : > { %s3106_s28 = scalar_select %p2489_p6, 1, 0 }
  0x11   : > { %p275_p8 = scmp.eq.s32.totalorder %s1770_s22, 1  ;;  %p2065_p10 = scmp.lt.s32.totalorder %s2375_s20, 2 }
  0x12   : > { %p2496_p11 = por %p269_p7, %p45_p0  ;;  %s345_s12 = sand.u32 1, %s2371_s19  }
  0x13   : > { %p2500_p12 = por %p275_p8, %p51_p3  ;;  %s1864_s13 = sshll.u32 %s2375_s20, 12 }
  0x14   : > { %s3107_s29 = scalar_select %p2496_p11, 1, 0 }
  0x15   : > { %s3108_s30 = scalar_select %p2500_p12, 1, 0 }
  0x16   : > { %s1773_s14 = sshll.u32 %s345_s12, 8  ;;  %s2509_s24 = scalar_lea.hbm %s3083_s0, %s1864_s13 }
  0x17   : > { %3109 = sst [smem:[#allocation14_spill]] %s3108_s30  ;;  %s349_s22 = scalar_lea.vmem [#allocation2], %s1773_s14 }
  0x18   : > { %s357_s25 = sshll.u32 %s349_s22, 4  ;;  %p2513_p13 = pnand %p2065_p10, %p2485_p5  ;;  %s2517_s25 = int_to_ptr.vmem [resolvable:$true] %s357_s25 }
  0x19   : > { %s2519_s19 = scalar_lea.sflag [#allocation3], %s345_s12  ;;  %s2253_s23 = scalar_lea.hbm %s2509_s24, 4096 }
  0x1a   : > { %p2254_p0 = scmp.ne.s32.totalorder %s2509_s24, %s2253_s23  ;;  %p2255_p1 = pneg %p2513_p13 }
  0x1b   : > { %s2258_s14 = scalar_lea.hbm %s3083_s0, 8192  ;;  %p2259_p4 = scmp.lt.s32.totalorder %s2509_s24, %s3083_s0 }
  0x1c   : > { %p2256_p2 = pnand %p2255_p1, %p2254_p0  ;;  %p2260_p5 = scmp.lt.s32.totalorder %s2258_s14, %s2253_s23 }
  0x1e   : > { %p2257_p3 = pneg %p2256_p2  ;;  %p2261_p7 = por %p2260_p5, %p2259_p4 }
  0x20   : > { %p2262_p8 = pnand %p2261_p7, %p2257_p3 }
  0x22   : > { %2265 = shalt.err (!%p2262_p8)
}
  0x23   : > { %s2266_s12 = scalar_lea.vmem %s2517_s25, 4096  ;;  %s2377_s22 = smov [#allocation2]  }
  0x24   : > { %p2267_p10 = scmp.ne.s32.totalorder %s2517_s25, %s2266_s12  ;;  %s2271_s30 = sshll.u32 %s2377_s22, 4  ;;  %s2272_s30 = int_to_ptr.vmem [resolvable:$false] %s2271_s30 }
  0x25   : > { %s2273_s13 = scalar_lea.vmem %s2272_s30, 8192  ;;  %p2274_p2 = scmp.lt.s32.totalorder %s2517_s25, %s2272_s30 }
  0x26   : > { %p2269_p9 = pnand %p2267_p10, %p2255_p1  ;;  %p2275_p12 = scmp.lt.s32.totalorder %s2273_s13, %s2266_s12 }
  0x28   : > { %p2270_p0 = pneg %p2269_p9  ;;  %p2276_p11 = por %p2275_p12, %p2274_p2 }
  0x2a   : > { %p2277_p6 = pnand %p2276_p11, %p2270_p0 }
  0x2c   : > { %2280 = shalt.err (!%p2277_p6)
}
  0x2d   : > { %s2378_s23 = smov 256   ;;  %s2379_s15 = smov 16  }
  0x2e   : > { %2057 = dma.hbm_to_vmem [thread:$0]  (!%p2513_p13), %s2509_s24, 4096, %s2517_s25, %s2519_s19, %s2378_s23, %s2378_s23, %s2379_s15  }
  0x2f   : > { %p1777_p9 = scmp.ge.s32.totalorder %s2375_s20, 1  ;;  %p374_p1 = scmp.lt.s32.totalorder %s2375_s20, 3 }
  0x31   : > { %p375_p3 = pnand %p1777_p9, %p374_p1 }
  0x32   : > { %s2543_s30 = sand.u32 (!%p375_p3), 1, %s2367_s18   ;;  %p3111_p6 = scmp.ne.s32.totalorder (!%p375_p3), %s3106_s28, 0 }
  0x33   : > { %378 = sbr.rel (%p375_p3) target bundleno = 1150 (0x47e), region = 60  ;;  %s1778_s14 = sshll.u32 (!%p375_p3), %s2543_s30, 8 }
  0x34   : > { %s381_s27 = scalar_lea.sflag (!%p375_p3), [#allocation3], %s2543_s30  ;;  %s2547_s16 = scalar_lea.vmem (!%p375_p3), [#allocation2], %s1778_s14 }
  0x38   : > { %2350 = dma.done.wait (%p3111_p6), %s381_s27, 4096  }
  0x39   : > { %2352 = vsyncadd (%p3111_p6), %s381_s27, 4294963200  ;;  %v2105_v0 = vld [vmem:[%s3085_s2 + $0x78] sm:$0xff]   ;;  %v2107_v2 = vld [vmem:[%s3085_s2 + $0x70] sm:$0xff]   ;;  %s1779_s13 = sshll.u32 %s2543_s30, 7  ;;  %s2380_s19 = smov 64   ;;  %vm1138_vm0 = vcmask 523264  }
  0x3a   : > { %v2106_v1 = vld [vmem:[%s3085_s2 + $0x38] sm:$0xff]   ;;  %1884 = vmatprep.subr.bf16.mxu0 %v2105_v0  ;;  %2032 = vmatprep.subr.bf16.mxu1 %v2105_v0  ;;  %v2108_v3 = vld [vmem:[%s3085_s2 + $0x30] sm:$0xff]   ;;  %v2109_v4 = vld [vmem:[%s3085_s2 + $0x68] sm:$0xff]   ;;  %s2698_s15 = scalar_lea.vmem [#allocation6], %s1779_s13  ;;  %s1781_s14 = sshll.u32 %s2467_s21, 4 }
  0x3b   : > { %1885 = vmatpush3.bf16.msra.mxu0 %v2106_v1  ;;  %2040 = vmatpush3.bf16.msra.mxu1 %v2106_v1  ;;  %v2110_v5 = vld [vmem:[%s3085_s2 + $0x28] sm:$0xff]   ;;  %v2111_v6 = vld [vmem:[%s3085_s2 + $0x60] sm:$0xff]   ;;  %v2113_v8 = vld [vmem:[%s3085_s2 + $0x58] sm:$0xff]   ;;  %p435_p11 = scmp.lt.s32.totalorder %s1781_s14, 31  ;;  %s3101_s23 = sshll.u32 %s2467_s21, 11 }
  0x3c   : > { %1886 = vmatprep.subr.bf16.mxu0 %v2107_v2  ;;  %2033 = vmatprep.subr.bf16.mxu1 %v2107_v2  ;;  %v2112_v7 = vld [vmem:[%s3085_s2 + $0x20] sm:$0xff]   ;;  %v2114_v9 = vld [vmem:[%s3085_s2 + $0x18] sm:$0xff]   ;;  %v2115_v10 = vld [vmem:[%s3085_s2 + $0x50] sm:$0xff]   ;;  %s1653_s26 = sshll.u32 %s2698_s15, 4  ;;  %p3112_p13 = scmp.ne.s32.totalorder %s3107_s29, 0  ;;  %s2944_s26 = int_to_ptr.vmem [resolvable:$true] %s1653_s26 }
  0x3d   : > { %v444_v11 = vld [vmem:[%s2547_s16 + $0x8] sm:$0xff]  ;;  %v446_v12 = vld [vmem:[%s2547_s16 + $0x18] sm:$0xff]  ;;  %v2116_v14 = vld [vmem:[%s3085_s2 + $0x10] sm:$0xff]   ;;  %s3123_s14 = smov (!%p435_p11, %s1781_s14), 31 }
  0x3e   : > { %v476_v13 = vpack.c.bf16 %v446_v12, %v444_v11  ;;  %v460_v15 = vld [vmem:[%s2547_s16 + $0x88] sm:$0xff]  ;;  %v462_v16 = vld [vmem:[%s2547_s16 + $0x98] sm:$0xff]  ;;  %v2119_v20 = vld [vmem:[%s3085_s2 + $0x40] sm:$0xff]   ;;  %s1782_s27 = sshll.u32 %s3123_s14, 3 }
  0x3f   : > { %1887 = vmatpush3.bf16.msra.mxu0 %v2108_v3  ;;  %2041 = vmatpush3.bf16.msra.mxu1 %v2108_v3  ;;  %v2117_v17 = vld [vmem:[%s3085_s2 + $0x48] sm:$0xff]   ;;  %v484_v18 = vpack.c.bf16 %v462_v16, %v460_v15  ;;  %v2120_v21 = vld [vmem:[%s3085_s2] sm:$0xff]   ;;  %v445_v23 = vld [vmem:[%s2547_s16 + $0x10] sm:$0xff]  ;;  %s2828_s24 = scalar_lea.vmem %s3084_s1, %s1782_s27  ;;  %s2941_s27 = scalar_lea.hbm %s3094_s11, %s3101_s23 }
  0x40   : > { %1888 = vmatprep.subr.bf16.mxu0 %v2109_v4  ;;  %2034 = vmatprep.subr.bf16.mxu1 %v2109_v4  ;;  %v2118_v19 = vld [vmem:[%s3085_s2 + $0x8] sm:$0xff]   ;;  %v443_v22 = vld [vmem:[%s2547_s16] sm:$0xff]  ;;  %v450_v25 = vld [vmem:[%s2547_s16 + $0x38] sm:$0xff] }
  0x41   : > { %658 = vmatprep.mubr.bf16.mxu0 %v476_v13  ;;  %690 = vmatprep.mubr.bf16.mxu1 %v484_v18  ;;  %v448_v24 = vld [vmem:[%s2547_s16 + $0x28] sm:$0xff]  ;;  %v459_v26 = vld [vmem:[%s2547_s16 + $0x80] sm:$0xff]  ;;  %v461_v27 = vld [vmem:[%s2547_s16 + $0x90] sm:$0xff]  ;;  %v475_v30 = vpack.c.bf16 %v445_v23, %v443_v22 }
  0x42   : > { %v464_v28 = vld [vmem:[%s2547_s16 + $0xa8] sm:$0xff]  ;;  %v466_v29 = vld [vmem:[%s2547_s16 + $0xb8] sm:$0xff]  ;;  %v478_v31 = vpack.c.bf16 %v450_v25, %v448_v24  ;;  %v483_v32 = vpack.c.bf16 %v461_v27, %v459_v26  ;;  %v447_v34 = vld [vmem:[%s2547_s16 + $0x20] sm:$0xff] }
  0x43   : > { %1889 = vmatpush3.bf16.msra.mxu0 %v2110_v5  ;;  %2042 = vmatpush3.bf16.msra.mxu1 %v2110_v5  ;;  %v486_v33 = vpack.c.bf16 %v466_v29, %v464_v28  ;;  %v449_v35 = vld [vmem:[%s2547_s16 + $0x30] sm:$0xff]  ;;  %v452_v36 = vld [vmem:[%s2547_s16 + $0x48] sm:$0xff]  ;;  %v454_v37 = vld [vmem:[%s2547_s16 + $0x58] sm:$0xff] }
  0x44   : > { %1890 = vmatprep.subr.bf16.mxu0 %v2111_v6  ;;  %2035 = vmatprep.subr.bf16.mxu1 %v2111_v6  ;;  %v463_v38 = vld [vmem:[%s2547_s16 + $0xa0] sm:$0xff]  ;;  %v465_v39 = vld [vmem:[%s2547_s16 + $0xb0] sm:$0xff]  ;;  %v468_v40 = vld [vmem:[%s2547_s16 + $0xc8] sm:$0xff]  ;;  %v477_v42 = vpack.c.bf16 %v449_v35, %v447_v34  ;;  %v480_v43 = vpack.c.bf16 %v454_v37, %v452_v36 }
  0x45   : > { %v470_v41 = vld [vmem:[%s2547_s16 + $0xd8] sm:$0xff]  ;;  %v485_v44 = vpack.c.bf16 %v465_v39, %v463_v38  ;;  %v451_v46 = vld [vmem:[%s2547_s16 + $0x40] sm:$0xff]  ;;  %v453_v47 = vld [vmem:[%s2547_s16 + $0x50] sm:$0xff] }
  0x46   : > { %v488_v45 = vpack.c.bf16 %v470_v41, %v468_v40  ;;  %v456_v48 = vld [vmem:[%s2547_s16 + $0x68] sm:$0xff]  ;;  %v458_v49 = vld [vmem:[%s2547_s16 + $0x78] sm:$0xff]  ;;  %v467_v50 = vld [vmem:[%s2547_s16 + $0xc0] sm:$0xff]  ;;  %v479_v54 = vpack.c.bf16 %v453_v47, %v451_v46 }
  0x47   : > { %1891 = vmatpush3.bf16.msra.mxu0 %v2112_v7  ;;  %2043 = vmatpush3.bf16.msra.mxu1 %v2112_v7  ;;  %v469_v51 = vld [vmem:[%s2547_s16 + $0xd0] sm:$0xff]  ;;  %v472_v52 = vld [vmem:[%s2547_s16 + $0xe8] sm:$0xff]  ;;  %v474_v53 = vld [vmem:[%s2547_s16 + $0xf8] sm:$0xff]  ;;  %v482_v55 = vpack.c.bf16 %v458_v49, %v456_v48 }
  0x48   : > { %1892 = vmatprep.subr.bf16.mxu0 %v2113_v8  ;;  %2036 = vmatprep.subr.bf16.mxu1 %v2113_v8  ;;  %v487_v56 = vpack.c.bf16 %v469_v51, %v467_v50  ;;  %v490_v57 = vpack.c.bf16 %v474_v53, %v472_v52  ;;  %v455_v58 = vld [vmem:[%s2547_s16 + $0x60] sm:$0xff]  ;;  %v457_v59 = vld [vmem:[%s2547_s16 + $0x70] sm:$0xff]  ;;  %v2121_v0 = vld [vmem:[%s3087_s4 + $0x38] sm:$0xff]  }
  0x49   : > { %v471_v60 = vld [vmem:[%s2547_s16 + $0xe0] sm:$0xff]  ;;  %v473_v61 = vld [vmem:[%s2547_s16 + $0xf0] sm:$0xff]  ;;  %v481_v62 = vpack.c.bf16 %v457_v59, %v455_v58  ;;  %v2123_v2 = vld [vmem:[%s3087_s4 + $0x28] sm:$0xff]   ;;  %s1623_s16 = scalar_lea.sflag [#allocation7], %s2543_s30 }
  0x4a   : > { %v489_v63 = vpack.c.bf16 %v473_v61, %v471_v60  ;;  %v2122_v1 = vld [vmem:[%s3087_s4 + $0x30] sm:$0xff]   ;;  %v2124_v3 = vld [vmem:[%s3087_s4 + $0x20] sm:$0xff]   ;;  %v2125_v4 = vld [vmem:[%s3087_s4 + $0x18] sm:$0xff]  }
  0x4b   : > { %1893 = vmatpush3.bf16.msra.mxu0 %v2114_v9  ;;  %2044 = vmatpush3.bf16.msra.mxu1 %v2114_v9  ;;  %v2126_v5 = vld [vmem:[%s3087_s4 + $0x10] sm:$0xff]   ;;  %v2127_v6 = vld [vmem:[%s3087_s4 + $0x8] sm:$0xff]   ;;  %v2128_v7 = vld [vmem:[%s3087_s4] sm:$0xff]  }
  0x4c   : > { %1894 = vmatprep.subr.bf16.mxu0 %v2115_v10  ;;  %2037 = vmatprep.subr.bf16.mxu1 %v2115_v10  ;;  %v2660_v11 = vld [vmem:[%s3086_s3] ss:$0 sm:$0xff] }
  0x4f   : > { %1895 = vmatpush3.bf16.msra.mxu0 %v2116_v14  ;;  %2045 = vmatpush3.bf16.msra.mxu1 %v2116_v14 }
  0x50   : > { %1896 = vmatprep.subr.bf16.mxu0 %v2117_v17  ;;  %2038 = vmatprep.subr.bf16.mxu1 %v2117_v17 }
  0x53   : > { %1897 = vmatpush3.bf16.msra.mxu0 %v2118_v19  ;;  %2046 = vmatpush3.bf16.msra.mxu1 %v2118_v19 }
  0x54   : > { %1898 = vmatprep.subr.bf16.mxu0 %v2119_v20  ;;  %2039 = vmatprep.subr.bf16.mxu1 %v2119_v20 }
  0x57   : > { %1899 = vmatpush3.bf16.msra.mxu0 %v2120_v21  ;;  %2047 = vmatpush3.bf16.msra.mxu1 %v2120_v21 }
  0x58   : > { %1976 = vmatprep.subr.bf16.mxu1 %v2121_v0 }
  0x5a   : > { %659 = vmatmul.mubr.bf16.vlgmr.msra.gmra.mxu0 %v475_v30  ;;  %691 = vmatmul.mubr.bf16.vlgmr.msra.gmra.mxu1 %v483_v32 }
  0x5b   : > { %666 = vmatprep.mubr.bf16.mxu0 %v478_v31  ;;  %698 = vmatprep.mubr.bf16.mxu1 %v486_v33 }
  0x5c   : > { %1977 = vmatpush3.bf16.msra.mxu1 %v2121_v0 }
  0x5d   : > { %1978 = vmatprep.subr.bf16.mxu1 %v2122_v1 }
  0x60   : > { %1979 = vmatpush3.bf16.msra.mxu1 %v2122_v1 }
  0x61   : > { %1980 = vmatprep.subr.bf16.mxu1 %v2123_v2 }
  0x62   : > { %667 = vmatmul.mubr.bf16.gmra.mxu0 %v477_v42  ;;  %699 = vmatmul.mubr.bf16.gmra.mxu1 %v485_v44 }
  0x63   : > { %674 = vmatprep.mubr.bf16.mxu0 %v480_v43  ;;  %706 = vmatprep.mubr.bf16.mxu1 %v488_v45 }
  0x64   : > { %1981 = vmatpush3.bf16.msra.mxu1 %v2123_v2 }
  0x65   : > { %1982 = vmatprep.subr.bf16.mxu1 %v2124_v3 }
  0x68   : > { %1983 = vmatpush3.bf16.msra.mxu1 %v2124_v3 }
  0x69   : > { %1984 = vmatprep.subr.bf16.mxu1 %v2125_v4 }
  0x6a   : > { %675 = vmatmul.mubr.bf16.gmra.mxu0 %v479_v54  ;;  %707 = vmatmul.mubr.bf16.gmra.mxu1 %v487_v56 }
  0x6b   : > { %682 = vmatprep.mubr.bf16.mxu0 %v482_v55  ;;  %714 = vmatprep.mubr.bf16.mxu1 %v490_v57 }
  0x6c   : > { %1985 = vmatpush3.bf16.msra.mxu1 %v2125_v4 }
  0x6d   : > { %1986 = vmatprep.subr.bf16.mxu1 %v2126_v5 }
  0x70   : > { %1987 = vmatpush3.bf16.msra.mxu1 %v2126_v5 }
  0x71   : > { %1988 = vmatprep.subr.bf16.mxu1 %v2127_v6 }
  0x72   : > { %683 = vmatmul.mubr.bf16.gmra.mxu0 %v481_v62  ;;  %715 = vmatmul.mubr.bf16.gmra.mxu1 %v489_v63 }
  0x74   : > { %1989 = vmatpush3.bf16.msra.mxu1 %v2127_v6 }
  0x75   : > { %1990 = vmatprep.subr.bf16.mxu1 %v2128_v7 }
  0x78   : > { %1991 = vmatpush3.bf16.msra.mxu1 %v2128_v7 }
 0x11a   : > { %v1900_v8 = vpop.f32.mrf.mxu0  ;;  %v1924_v9 = vpop.f32.mrf.mxu1 }
 0x11c   : > { %v1901_v10 = vpop.f32.mrf.mxu0  ;;  %v1925_v13 = vpop.f32.mrf.mxu1 }
 0x11d   : > { %v1902_v12 = vadd.f32 %v1901_v10, %v1900_v8  ;;  %v1926_v43 = vadd.f32 %v1925_v13, %v1924_v9 }
 0x11e   : > { %v1903_v14 = vpop.f32.mrf.mxu0  ;;  %v1927_v15 = vpop.f32.mrf.mxu1 }
 0x11f   : > { %v661_v16 = vadd.f32 %v1902_v12, %v2660_v11  ;;  %v693_v53 = vadd.f32 %v1926_v43, %v2660_v11 }
 0x120   : > { %v1904_v17 = vpop.f32.mrf.mxu0  ;;  %v1928_v19 = vpop.f32.mrf.mxu1 }
 0x121   : > { %v1905_v18 = vadd.f32 %v1904_v17, %v1903_v14  ;;  %2157 = vtanh.f32 %v661_v16  ;;  %v1929_v47 = vadd.f32 %v1928_v19, %v1927_v15 }
 0x122   : > { %v1906_v20 = vpop.f32.mrf.mxu0  ;;  %v1930_v22 = vpop.f32.mrf.mxu1 }
 0x123   : > { %v664_v21 = vadd.f32 %v1905_v18, %v2660_v11  ;;  %v696_v55 = vadd.f32 %v1929_v47, %v2660_v11 }
 0x124   : > { %v1907_v23 = vpop.f32.mrf.mxu0  ;;  %v1931_v25 = vpop.f32.mrf.mxu1 }
 0x125   : > { %2159 = vtanh.f32 %v664_v21  ;;  %v1908_v24 = vadd.f32 %v1907_v23, %v1906_v20  ;;  %v1932_v58 = vadd.f32 %v1931_v25, %v1930_v22 }
 0x126   : > { %v1909_v26 = vpop.f32.mrf.mxu0  ;;  %v1933_v27 = vpop.f32.mrf.mxu1 }
 0x127   : > { %v669_v28 = vadd.f32 %v1908_v24, %v2660_v11  ;;  %v701_v4 = vadd.f32 %v1932_v58, %v2660_v11 }
 0x128   : > { %v1910_v29 = vpop.f32.mrf.mxu0  ;;  %v1934_v31 = vpop.f32.mrf.mxu1 }
 0x129   : > { %v1911_v30 = vadd.f32 %v1910_v29, %v1909_v26  ;;  %2161 = vtanh.f32 %v669_v28  ;;  %v1935_v61 = vadd.f32 %v1934_v31, %v1933_v27 }
 0x12a   : > { %v1912_v32 = vpop.f32.mrf.mxu0  ;;  %v1936_v34 = vpop.f32.mrf.mxu1 }
 0x12b   : > { %v672_v33 = vadd.f32 %v1911_v30, %v2660_v11  ;;  %v704_v7 = vadd.f32 %v1935_v61, %v2660_v11 }
 0x12c   : > { %v1913_v35 = vpop.f32.mrf.mxu0  ;;  %v1937_v37 = vpop.f32.mrf.mxu1 }
 0x12d   : > { %2163 = vtanh.f32 %v672_v33  ;;  %v1914_v36 = vadd.f32 %v1913_v35, %v1912_v32  ;;  %v1938_v0 = vadd.f32 %v1937_v37, %v1936_v34  ;;  %v2129_v33 = vld [vmem:[%s3089_s6 + $0x18] sm:$0xff]   ;;  %v2130_v34 = vld [vmem:[%s3089_s6 + $0x10] sm:$0xff]   ;;  %v2131_v35 = vld [vmem:[%s3089_s6 + $0x8] sm:$0xff]  }
 0x12e   : > { %v1915_v38 = vpop.f32.mrf.mxu0  ;;  %v1939_v39 = vpop.f32.mrf.mxu1  ;;  %2008 = vmatprep.subr.bf16.mxu1 %v2129_v33 }
 0x12f   : > { %v677_v40 = vadd.f32 %v1914_v36, %v2660_v11  ;;  %v2158_v42 = vpop.eup %2157  ;;  %v709_v8 = vadd.f32 %v1938_v0, %v2660_v11  ;;  %v2691_v36 = vld [vmem:[%s3088_s5] ss:$0 sm:$0xff] }
 0x130   : > { %v1916_v41 = vpop.f32.mrf.mxu0  ;;  %v1940_v45 = vpop.f32.mrf.mxu1 }
 0x131   : > { %v1917_v44 = vadd.f32 %v1916_v41, %v1915_v38  ;;  %2165 = vtanh.f32 %v677_v40  ;;  %v1941_v2 = vadd.f32 %v1940_v45, %v1939_v39 }
 0x132   : > { %v2160_v46 = vpop.eup %2159  ;;  %v1918_v48 = vpop.f32.mrf.mxu0 }
 0x133   : > { %v680_v49 = vadd.f32 %v1917_v44, %v2660_v11  ;;  %v739_v50 = vpack.c.bf16 %v2160_v46, %v2158_v42  ;;  %v1942_v51 = vpop.f32.mrf.mxu1  ;;  %v712_v9 = vadd.f32 %v1941_v2, %v2660_v11 }
 0x134   : > { %v1919_v52 = vpop.f32.mrf.mxu0 }
 0x135   : > { %2167 = vtanh.f32 %v680_v49  ;;  %v1920_v54 = vadd.f32 %v1919_v52, %v1918_v48  ;;  %1992 = vmatprep.mubr.bf16.mxu1 %v739_v50  ;;  %v1943_v57 = vpop.f32.mrf.mxu1 }
 0x136   : > { %v1921_v56 = vpop.f32.mrf.mxu0  ;;  %v2162_v62 = vpop.eup %2161  ;;  %2169 = vtanh.f32 %v693_v53  ;;  %v1944_v12 = vadd.f32 %v1943_v57, %v1942_v51  ;;  %v2132_v53 = vld [vmem:[%s3089_s6] sm:$0xff]  }
 0x137   : > { %v685_v59 = vadd.f32 %v1920_v54, %v2660_v11  ;;  %2171 = vtanh.f32 %v696_v55  ;;  %v1945_v3 = vpop.f32.mrf.mxu1 }
 0x138   : > { %v1922_v60 = vpop.f32.mrf.mxu0  ;;  %v717_v17 = vadd.f32 %v1944_v12, %v2660_v11 }
 0x139   : > { %v1923_v63 = vadd.f32 %v1922_v60, %v1921_v56  ;;  %2173 = vtanh.f32 %v685_v59  ;;  %v1946_v10 = vpop.f32.mrf.mxu1 }
 0x13a   : > { %v2164_v1 = vpop.eup %2163  ;;  %v1947_v14 = vadd.f32 %v1946_v10, %v1945_v3 }
 0x13b   : > { %v688_v5 = vadd.f32 %v1923_v63, %v2660_v11  ;;  %v740_v6 = vpack.c.bf16 %v2164_v1, %v2162_v62 }
 0x13c   : > { %v720_v18 = vadd.f32 %v1947_v14, %v2660_v11 }
 0x13d   : > { %2175 = vtanh.f32 %v688_v5  ;;  %1993 = vmatmul.mubr.bf16.vlgmr.msra.gmra.mxu1 %v740_v6 }
 0x13e   : > { %2177 = vtanh.f32 %v701_v4  ;;  %v2166_v13 = vpop.eup %2165  ;;  %2009 = vmatpush3.bf16.msra.mxu1 %v2129_v33 }
 0x13f   : > { %2179 = vtanh.f32 %v704_v7  ;;  %2010 = vmatprep.subr.bf16.mxu1 %v2130_v34 }
 0x140   : > { %2181 = vtanh.f32 %v709_v8 }
 0x141   : > { %2183 = vtanh.f32 %v712_v9 }
 0x142   : > { %v2168_v15 = vpop.eup %2167  ;;  %2185 = vtanh.f32 %v717_v17  ;;  %2011 = vmatpush3.bf16.msra.mxu1 %v2130_v34 }
 0x143   : > { %v741_v16 = vpack.c.bf16 %v2168_v15, %v2166_v13  ;;  %v2170_v19 = vpop.eup %2169  ;;  %2187 = vtanh.f32 %v720_v18  ;;  %2012 = vmatprep.subr.bf16.mxu1 %v2131_v35 }
 0x144   : > { %v2172_v20 = vpop.eup %2171 }
 0x145   : > { %1996 = vmatprep.mubr.bf16.mxu1 %v741_v16  ;;  %v743_v23 = vpack.c.bf16 %v2172_v20, %v2170_v19 }
 0x146   : > { %v2174_v21 = vpop.eup %2173  ;;  %2013 = vmatpush3.bf16.msra.mxu1 %v2131_v35 }
 0x147   : > { %2014 = vmatprep.subr.bf16.mxu1 %v2132_v53 }
 0x14a   : > { %v2176_v22 = vpop.eup %2175  ;;  %2015 = vmatpush3.bf16.msra.mxu1 %v2132_v53 }
 0x14b   : > { %v742_v24 = vpack.c.bf16 %v2176_v22, %v2174_v21  ;;  %v2178_v25 = vpop.eup %2177 }
 0x14c   : > { %v2180_v26 = vpop.eup %2179 }
 0x14d   : > { %1997 = vmatmul.mubr.bf16.gmra.mxu1 %v742_v24  ;;  %v2182_v27 = vpop.eup %2181  ;;  %v744_v29 = vpack.c.bf16 %v2180_v26, %v2178_v25 }
 0x14e   : > { %2000 = vmatprep.mubr.bf16.mxu1 %v743_v23  ;;  %v2184_v28 = vpop.eup %2183 }
 0x14f   : > { %v745_v30 = vpack.c.bf16 %v2184_v28, %v2182_v27  ;;  %v2186_v31 = vpop.eup %2185 }
 0x150   : > { %v2188_v11 = vpop.eup %2187 }
 0x151   : > { %v746_v32 = vpack.c.bf16 %v2188_v11, %v2186_v31 }
 0x155   : > { %2001 = vmatmul.mubr.bf16.gmra.mxu1 %v744_v29 }
 0x156   : > { %2004 = vmatprep.mubr.bf16.mxu1 %v745_v30 }
 0x15d   : > { %2005 = vmatmul.mubr.bf16.gmra.mxu1 %v746_v32 }
 0x1fd   : > { %v1994_v37 = vpop.f32.mrf.mxu1 }
 0x1fe   : > { %v2694_v38 = vadd.f32 %v1994_v37, %v2691_v36 }
 0x1ff   : > { %v852_v39 = vpop.f32.mrf.mxu1 }
 0x200   : > { %917 = vst [vmem:[%s2698_s15 + $0x10] sm:$0xff] %v2694_v38  ;;  %v933_v40 = vmul.f32 0.5, %v2694_v38  ;;  %v2704_v41 = vadd.f32 %v2691_v36, %v852_v39 }
 0x201   : > { %v1995_v42 = vpop.f32.mrf.mxu1 }
 0x202   : > { %v951_v43 = vmul.f32 1.442695, %v933_v40  ;;  %915 = vst [vmem:[%s2698_s15] sm:$0xff] %v2704_v41  ;;  %v931_v44 = vmul.f32 0.5, %v2704_v41  ;;  %v2710_v45 = vadd.f32 %v1995_v42, %v2691_v36 }
 0x203   : > { %v855_v46 = vpop.f32.mrf.mxu1 }
 0x204   : > { %2189 = vpow2.f32 %v951_v43  ;;  %v947_v47 = vmul.f32 1.442695, %v931_v44  ;;  %918 = vst [vmem:[%s2698_s15 + $0x18] sm:$0xff] %v2710_v45  ;;  %v934_v48 = vmul.f32 0.5, %v2710_v45  ;;  %v2716_v49 = vadd.f32 %v2691_v36, %v855_v46 }
 0x206   : > { %2191 = vpow2.f32 %v947_v47  ;;  %v953_v50 = vmul.f32 1.442695, %v934_v48  ;;  %916 = vst [vmem:[%s2698_s15 + $0x8] sm:$0xff] %v2716_v49  ;;  %v932_v51 = vmul.f32 0.5, %v2716_v49 }
 0x208   : > { %2193 = vpow2.f32 %v953_v50  ;;  %v949_v52 = vmul.f32 1.442695, %v932_v51 }
 0x20a   : > { %2195 = vpow2.f32 %v949_v52 }
 0x20d   : > { %v1998_v54 = vpop.f32.mrf.mxu1 }
 0x20e   : > { %v2725_v55 = vadd.f32 %v1998_v54, %v2691_v36 }
 0x20f   : > { %v868_v56 = vpop.f32.mrf.mxu1 }
 0x210   : > { %921 = vst [vmem:[%s2698_s15 + $0x30] sm:$0xff] %v2725_v55  ;;  %v2730_v57 = vadd.f32 %v2691_v36, %v868_v56  ;;  %v937_v59 = vmul.f32 0.5, %v2725_v55 }
 0x211   : > { %v2190_v58 = vpop.eup %2189  ;;  %v1999_v60 = vpop.f32.mrf.mxu1 }
 0x212   : > { %919 = vst [vmem:[%s2698_s15 + $0x20] sm:$0xff] %v2730_v57  ;;  %v935_v61 = vmul.f32 0.5, %v2730_v57  ;;  %v2737_v62 = vadd.f32 %v1999_v60, %v2691_v36  ;;  %1015 = vrot.lane.b32.xlu1 %v2190_v58, %s2380_s19  ;;  %v959_v4 = vmul.f32 1.442695, %v937_v59  ;;  %v2133_v58 = vld [vmem:[%s3091_s8 + $0x70] ss:$8 sps:$4 sm:$0xff]  }
 0x213   : > { %v2192_v63 = vpop.eup %2191  ;;  %v871_v0 = vpop.f32.mrf.mxu1  ;;  %v2135_v59 = vld [vmem:[%s3091_s8 + $0x74] ss:$8 sps:$4 sm:$0xff]   ;;  %v2138_v60 = vld [vmem:[%s3091_s8 + $0x64] ss:$8 sps:$4 sm:$0xff]  }
 0x214   : > { %v955_v1 = vmul.f32 1.442695, %v935_v61  ;;  %922 = vst [vmem:[%s2698_s15 + $0x38] sm:$0xff] %v2737_v62  ;;  %v2743_v2 = vadd.f32 %v2691_v36, %v871_v0  ;;  %1011 = vrot.lane.b32.xlu0 %v2192_v63, %s2380_s19  ;;  %v938_v5 = vmul.f32 0.5, %v2737_v62  ;;  %1392 = vmatprep.subr.bf16.mxu0 %v2135_v59  ;;  %v2136_v0 = vld [vmem:[%s3091_s8 + $0x60] ss:$8 sps:$4 sm:$0xff]  }
 0x215   : > { %v2194_v3 = vpop.eup %2193  ;;  %v2002_v6 = vpop.f32.mrf.mxu1  ;;  %1393 = vmatpush1.bf16.msra.mxu0 %v2133_v58 }
 0x216   : > { %2197 = vpow2.f32 %v955_v1  ;;  %920 = vst [vmem:[%s2698_s15 + $0x28] sm:$0xff] %v2743_v2  ;;  %v936_v7 = vmul.f32 0.5, %v2743_v2  ;;  %v2751_v8 = vadd.f32 %v2002_v6, %v2691_v36  ;;  %1017 = vrot.lane.b32.xlu1 %v2194_v3, %s2380_s19  ;;  %v961_v14 = vmul.f32 1.442695, %v938_v5  ;;  %1394 = vmatprep.subr.bf16.mxu0 %v2138_v60  ;;  %v979_v3 = vld [vmem:[%s2828_s24] sm:$0xff]  ;;  %v982_v5 = vld [vmem:[%s2828_s24 + $0x18] sm:$0xff] }
 0x217   : > { %v2196_v9 = vpop.eup %2195  ;;  %v884_v10 = vpop.f32.mrf.mxu1  ;;  %2199 = vpow2.f32 %v959_v4  ;;  %v981_v6 = vld [vmem:[%s2828_s24 + $0x10] sm:$0xff] }
 0x218   : > { %v957_v12 = vmul.f32 1.442695, %v936_v7  ;;  %925 = vst [vmem:[%s2698_s15 + $0x50] sm:$0xff] %v2751_v8  ;;  %v2757_v13 = vadd.f32 %v2691_v36, %v884_v10  ;;  %1013 = vrot.lane.b32.xlu0 %v2196_v9, %s2380_s19  ;;  %v941_v15 = vmul.f32 0.5, %v2751_v8  ;;  %v980_v9 = vld [vmem:[%s2828_s24 + $0x8] sm:$0xff] }
 0x219   : > { %v2003_v16 = vpop.f32.mrf.mxu1  ;;  %1395 = vmatpush1.bf16.msra.mxu0 %v2136_v0 }
 0x21a   : > { %2201 = vpow2.f32 %v957_v12  ;;  %923 = vst [vmem:[%s2698_s15 + $0x40] sm:$0xff] %v2757_v13  ;;  %v939_v17 = vmul.f32 0.5, %v2757_v13  ;;  %v2765_v18 = vadd.f32 %v2003_v16, %v2691_v36  ;;  %v967_v22 = vmul.f32 1.442695, %v941_v15 }
 0x21b   : > { %v887_v19 = vpop.f32.mrf.mxu1  ;;  %2203 = vpow2.f32 %v961_v14 }
 0x21c   : > { %v963_v20 = vmul.f32 1.442695, %v939_v17  ;;  %926 = vst [vmem:[%s2698_s15 + $0x58] sm:$0xff] %v2765_v18  ;;  %v2770_v21 = vadd.f32 %v2691_v36, %v887_v19  ;;  %v942_v23 = vmul.f32 0.5, %v2765_v18 }
 0x21d   : > { %v2006_v24 = vpop.f32.mrf.mxu1 }
 0x21e   : > { %2205 = vpow2.f32 %v963_v20  ;;  %924 = vst [vmem:[%s2698_s15 + $0x48] sm:$0xff] %v2770_v21  ;;  %v940_v25 = vmul.f32 0.5, %v2770_v21  ;;  %v2777_v26 = vadd.f32 %v2006_v24, %v2691_v36  ;;  %v969_v31 = vmul.f32 1.442695, %v942_v23 }
 0x21f   : > { %v900_v27 = vpop.f32.mrf.mxu1  ;;  %2207 = vpow2.f32 %v967_v22 }
 0x220   : > { %v965_v28 = vmul.f32 1.442695, %v940_v25  ;;  %929 = vst [vmem:[%s2698_s15 + $0x70] sm:$0xff] %v2777_v26  ;;  %v945_v29 = vmul.f32 0.5, %v2777_v26  ;;  %v2783_v30 = vadd.f32 %v2691_v36, %v900_v27  ;;  %v983_v25 = vld [vmem:[%s2828_s24 + $0x20] sm:$0xff] }
 0x221   : > { %v2007_v11 = vpop.f32.mrf.mxu1 }
 0x222   : > { %2209 = vpow2.f32 %v965_v28  ;;  %927 = vst [vmem:[%s2698_s15 + $0x60] sm:$0xff] %v2783_v30  ;;  %v943_v32 = vmul.f32 0.5, %v2783_v30  ;;  %v2789_v33 = vadd.f32 %v2007_v11, %v2691_v36  ;;  %v975_v37 = vmul.f32 1.442695, %v945_v29  ;;  %v984_v28 = vld [vmem:[%s2828_s24 + $0x28] sm:$0xff] }
 0x223   : > { %v2198_v34 = vpop.eup %2197  ;;  %v903_v35 = vpop.f32.mrf.mxu1  ;;  %2211 = vpow2.f32 %v969_v31 }
 0x224   : > { %v971_v39 = vmul.f32 1.442695, %v943_v32  ;;  %930 = vst [vmem:[%s2698_s15 + $0x78] sm:$0xff] %v2789_v33  ;;  %v946_v40 = vmul.f32 0.5, %v2789_v33  ;;  %v2795_v42 = vadd.f32 %v2691_v36, %v903_v35  ;;  %1019 = vrot.lane.b32.xlu0 %v2198_v34, %s2380_s19  ;;  %v2200_v43 = vpop.eup %2199 }
 0x226   : > { %2213 = vpow2.f32 %v971_v39  ;;  %928 = vst [vmem:[%s2698_s15 + $0x68] sm:$0xff] %v2795_v42  ;;  %v944_v44 = vmul.f32 0.5, %v2795_v42  ;;  %v977_v47 = vmul.f32 1.442695, %v946_v40 }
 0x227   : > { %v2202_v46 = vpop.eup %2201  ;;  %2215 = vpow2.f32 %v975_v37  ;;  %v987_v37 = vld [vmem:[%s2828_s24 + $0x40] sm:$0xff] }
 0x228   : > { %v973_v48 = vmul.f32 1.442695, %v944_v44  ;;  %1021 = vrot.lane.b32.xlu1 %v2202_v46, %s2380_s19  ;;  %1023 = vrot.lane.b32.xlu0 %v2200_v43, %s2380_s19  ;;  %v2204_v50 = vpop.eup %2203  ;;  %v988_v44 = vld [vmem:[%s2828_s24 + $0x48] sm:$0xff] }
 0x22a   : > { %2217 = vpow2.f32 %v973_v48 }
 0x22b   : > { %v2206_v36 = vpop.eup %2205  ;;  %2219 = vpow2.f32 %v977_v47 }
 0x22c   : > { %1025 = vrot.lane.b32.xlu1 %v2204_v50, %s2380_s19  ;;  %1027 = vrot.lane.b32.xlu0 %v2206_v36, %s2380_s19  ;;  %v2208_v51 = vpop.eup %2207  ;;  %v989_v50 = vld [vmem:[%s2828_s24 + $0x50] sm:$0xff] }
 0x22f   : > { %v2210_v52 = vpop.eup %2209 }
 0x230   : > { %1029 = vrot.lane.b32.xlu1 %v2210_v52, %s2380_s19  ;;  %1031 = vrot.lane.b32.xlu0 %v2208_v51, %s2380_s19  ;;  %v2212_v53 = vpop.eup %2211  ;;  %v990_v52 = vld [vmem:[%s2828_s24 + $0x58] sm:$0xff] }
 0x233   : > { %v2214_v54 = vpop.eup %2213 }
 0x234   : > { %1033 = vrot.lane.b32.xlu1 %v2212_v53, %s2380_s19  ;;  %1035 = vrot.lane.b32.xlu0 %v2214_v54, %s2380_s19  ;;  %v2216_v56 = vpop.eup %2215 }
 0x237   : > { %v2218_v61 = vpop.eup %2217 }
 0x238   : > { %1037 = vrot.lane.b32.xlu1 %v2218_v61, %s2380_s19  ;;  %1039 = vrot.lane.b32.xlu0 %v2216_v56, %s2380_s19  ;;  %v2220_v63 = vpop.eup %2219  ;;  %v992_v61 = vld [vmem:[%s2828_s24 + $0x68] sm:$0xff] }
 0x23c   : > { %1041 = vrot.lane.b32.xlu1 %v2220_v63, %s2380_s19  ;;  %s2382_s19 = smov [#allocation6]  }
 0x23d   : > { %s2285_s25 = sshll.u32 %s2382_s19, 4  ;;  %s2286_s25 = int_to_ptr.vmem [resolvable:$false] %s2285_s25 }
 0x23e   : > { %s2287_s12 = scalar_lea.vmem %s2286_s25, 4096  ;;  %p2288_p7 = scmp.lt.s32.totalorder %s2944_s26, %s2286_s25 }
 0x284   : > { %v1016_v1 = vpop.permute.xlu1 %1015 }
 0x285   : > { %v1061_v14 = vmul.f32 %v1016_v1, %v981_v6  ;;  %v994_v6 = vld [vmem:[%s2828_s24 + $0x78] sm:$0xff] }
 0x286   : > { %v1012_v4 = vpop.permute.xlu0 %1011 }
 0x287   : > { %v1059_v10 = vmul.f32 %v1012_v4, %v979_v3  ;;  %v1077_v22 = vadd.f32 %v1061_v14, %v2694_v38  ;;  %v993_v3 = vld [vmem:[%s2828_s24 + $0x70] sm:$0xff] }
 0x288   : > { %v1018_v7 = vpop.permute.xlu1 %1017 }
 0x289   : > { %v1062_v12 = vmul.f32 %v1018_v7, %v982_v5  ;;  %v1075_v19 = vadd.f32 %v1059_v10, %v2704_v41  ;;  %v985_v41 = vld [vmem:[%s2828_s24 + $0x30] sm:$0xff] }
 0x28a   : > { %v1014_v15 = vpop.permute.xlu0 %1013 }
 0x28b   : > { %v1060_v16 = vmul.f32 %v1014_v15, %v980_v9  ;;  %v1078_v17 = vadd.f32 %v1062_v12, %v2710_v45 }
 0x28d   : > { %v1076_v20 = vadd.f32 %v1060_v16, %v2716_v49  ;;  %v1092_v24 = vpack.c.bf16 %v1078_v17, %v1077_v22  ;;  %v986_v49 = vld [vmem:[%s2828_s24 + $0x38] sm:$0xff]  ;;  %v2148_v22 = vld [vmem:[%s3091_s8 + $0x20] ss:$8 sps:$4 sm:$0xff]  }
 0x28e   : > { %v2147_v17 = vld [vmem:[%s3091_s8 + $0x34] ss:$8 sps:$4 sm:$0xff]  }
 0x28f   : > { %v1091_v23 = vpack.c.bf16 %v1076_v20, %v1075_v19  ;;  %v2145_v19 = vld [vmem:[%s3091_s8 + $0x30] ss:$8 sps:$4 sm:$0xff]   ;;  %v2150_v20 = vld [vmem:[%s3091_s8 + $0x24] ss:$8 sps:$4 sm:$0xff]  }
 0x291   : > { %2016 = vmatprep.mubr.msk.bf16.mxu1 %vm1138_vm0, %v1091_v23  ;;  %v2153_v23 = vld [vmem:[%s3091_s8 + $0x14] ss:$8 sps:$4 sm:$0xff]  }
 0x292   : > { %2017 = vmatmul.mubr.msk.bf16.vlgmr.msra.gmra.mxu1 %vm1138_vm0, %v1092_v24  ;;  %v2151_v24 = vld [vmem:[%s3091_s8 + $0x10] ss:$8 sps:$4 sm:$0xff]  }
 0x296   : > { %v1020_v27 = vpop.permute.xlu0 %1019 }
 0x297   : > { %v1063_v45 = vmul.f32 %v1020_v27, %v983_v25  ;;  %v2156_v25 = vld [vmem:[%s3091_s8 + $0x4] ss:$8 sps:$4 sm:$0xff]   ;;  %v2154_v27 = vld [vmem:[%s3091_s8] ss:$8 sps:$4 sm:$0xff]  }
 0x299   : > { %v1079_v38 = vadd.f32 %v1063_v45, %v2730_v57 }
 0x29a   : > { %v1022_v29 = vpop.permute.xlu1 %1021  ;;  %v1024_v31 = vpop.permute.xlu0 %1023 }
 0x29b   : > { %v1064_v11 = vmul.f32 %v1022_v29, %v984_v28  ;;  %v1065_v34 = vmul.f32 %v1024_v31, %v985_v41  ;;  %v2381_v28 = vmov 0   ;;  %v2910_v41 = vld [vmem:[%s3090_s7] ss:$0 sm:$0xff] }
 0x29c   : > { %1424 = vmatprep.mubr.bf16.mxu0 %v2381_v28 }
 0x29d   : > { %v1080_v32 = vadd.f32 %v1064_v11, %v2743_v2  ;;  %v1081_v46 = vadd.f32 %v1065_v34, %v2725_v55 }
 0x29e   : > { %v1026_v35 = vpop.permute.xlu1 %1025  ;;  %v1028_v39 = vpop.permute.xlu0 %1027 }
 0x29f   : > { %v1093_v40 = vpack.c.bf16 %v1080_v32, %v1079_v38  ;;  %v1066_v43 = vmul.f32 %v1026_v35, %v986_v49  ;;  %v1067_v48 = vmul.f32 %v1028_v39, %v987_v37 }
 0x2a1   : > { %v1082_v47 = vadd.f32 %v1066_v43, %v2737_v62  ;;  %2020 = vmatprep.mubr.msk.bf16.mxu1 %vm1138_vm0, %v1093_v40  ;;  %v1083_v53 = vadd.f32 %v1067_v48, %v2757_v13  ;;  %v991_v62 = vld [vmem:[%s2828_s24 + $0x60] sm:$0xff]  ;;  %s2281_s24 = scalar_lea.vmem %s2944_s26, 2048 }
 0x2a2   : > { %v1030_v57 = vpop.permute.xlu1 %1029  ;;  %v1032_v2 = vpop.permute.xlu0 %1031  ;;  %p2282_p12 = scmp.ne.s32.totalorder %s2944_s26, %s2281_s24  ;;  %p2289_p8 = scmp.lt.s32.totalorder %s2287_s12, %s2281_s24 }
 0x2a3   : > { %v1094_v36 = vpack.c.bf16 %v1082_v47, %v1081_v46  ;;  %v1068_v51 = vmul.f32 %v1030_v57, %v988_v44  ;;  %v1069_v56 = vmul.f32 %v1032_v2, %v989_v50 }
 0x2a4   : > { %p2283_p4 = pnand %p2282_p12, %p3112_p13  ;;  %p2290_p10 = por %p2289_p8, %p2288_p7 }
 0x2a5   : > { %v1084_v54 = vadd.f32 %v1068_v51, %v2770_v21  ;;  %2021 = vmatmul.mubr.msk.bf16.gmra.mxu1 %vm1138_vm0, %v1094_v36  ;;  %v1085_v63 = vadd.f32 %v1069_v56, %v2751_v8 }
 0x2a6   : > { %v1034_v55 = vpop.permute.xlu1 %1033  ;;  %v1036_v58 = vpop.permute.xlu0 %1035  ;;  %p2284_p5 = pneg %p2283_p4 }
 0x2a7   : > { %v1095_v59 = vpack.c.bf16 %v1084_v54, %v1083_v53  ;;  %v1070_v60 = vmul.f32 %v1034_v55, %v990_v52  ;;  %v1071_v1 = vmul.f32 %v1036_v58, %v991_v62 }
 0x2a8   : > { %p2291_p0 = pnand %p2290_p10, %p2284_p5 }
 0x2a9   : > { %v1086_v0 = vadd.f32 %v1070_v60, %v2765_v18  ;;  %2024 = vmatprep.mubr.msk.bf16.mxu1 %vm1138_vm0, %v1095_v59  ;;  %v1087_v7 = vadd.f32 %v1071_v1, %v2783_v30  ;;  %v2141_v30 = vld [vmem:[%s3091_s8 + $0x54] ss:$8 sps:$4 sm:$0xff]  }
 0x2aa   : > { %v1038_v13 = vpop.permute.xlu1 %1037  ;;  %v1040_v21 = vpop.permute.xlu0 %1039  ;;  %1396 = vmatprep.subr.bf16.mxu0 %v2141_v30 }
 0x2ab   : > { %v1096_v4 = vpack.c.bf16 %v1086_v0, %v1085_v63  ;;  %v1072_v5 = vmul.f32 %v1038_v13, %v992_v61  ;;  %v1073_v10 = vmul.f32 %v1040_v21, %v993_v3 }
 0x2ad   : > { %v1088_v9 = vadd.f32 %v1072_v5, %v2795_v42  ;;  %2025 = vmatmul.mubr.msk.bf16.gmra.mxu1 %vm1138_vm0, %v1096_v4  ;;  %v1089_v18 = vadd.f32 %v1073_v10, %v2777_v26  ;;  %v2139_v42 = vld [vmem:[%s3091_s8 + $0x50] ss:$8 sps:$4 sm:$0xff]   ;;  %v2144_v26 = vld [vmem:[%s3091_s8 + $0x44] ss:$8 sps:$4 sm:$0xff]  }
 0x2ae   : > { %v1042_v12 = vpop.permute.xlu1 %1041  ;;  %1397 = vmatpush1.bf16.msra.mxu0 %v2139_v42 }
 0x2af   : > { %v1097_v8 = vpack.c.bf16 %v1088_v9, %v1087_v7  ;;  %v1074_v14 = vmul.f32 %v1042_v12, %v994_v6  ;;  %1398 = vmatprep.subr.bf16.mxu0 %v2144_v26 }
 0x2b1   : > { %v1090_v15 = vadd.f32 %v1074_v14, %v2789_v33  ;;  %2028 = vmatprep.mubr.msk.bf16.mxu1 %vm1138_vm0, %v1097_v8  ;;  %v2142_v33 = vld [vmem:[%s3091_s8 + $0x40] ss:$8 sps:$4 sm:$0xff]  }
 0x2b2   : > { %1399 = vmatpush1.bf16.msra.mxu0 %v2142_v33 }
 0x2b3   : > { %v1098_v16 = vpack.c.bf16 %v1090_v15, %v1089_v18  ;;  %1400 = vmatprep.subr.bf16.mxu0 %v2147_v17 }
 0x2b5   : > { %2029 = vmatmul.mubr.msk.bf16.gmra.mxu1 %vm1138_vm0, %v1098_v16 }
 0x2b6   : > { %1401 = vmatpush1.bf16.msra.mxu0 %v2145_v19 }
 0x2b7   : > { %1402 = vmatprep.subr.bf16.mxu0 %v2150_v20 }
 0x2ba   : > { %1403 = vmatpush1.bf16.msra.mxu0 %v2148_v22 }
 0x2bb   : > { %1404 = vmatprep.subr.bf16.mxu0 %v2153_v23 }
 0x2be   : > { %1405 = vmatpush1.bf16.msra.mxu0 %v2151_v24 }
 0x2bf   : > { %1406 = vmatprep.subr.bf16.mxu0 %v2156_v25 }
 0x2c2   : > { %1407 = vmatpush1.bf16.msra.mxu0 %v2154_v27 }
 0x352   : > { %v2018_v45 = vpop.f32.mrf.mxu1 }
 0x353   : > { %v1206_v34 = vadd.f32 %v2018_v45, %v2910_v41 }
 0x354   : > { %v1197_v29 = vpop.f32.mrf.mxu1 }
 0x355   : > { %v1198_v31 = vadd.f32 %v2910_v41, %v1197_v29 }
 0x356   : > { %v2019_v11 = vpop.f32.mrf.mxu1 }
 0x357   : > { %2221 = vtanh.f32 %v1198_v31  ;;  %v1209_v32 = vadd.f32 %v2019_v11, %v2910_v41 }
 0x358   : > { %v1200_v49 = vpop.f32.mrf.mxu1 }
 0x359   : > { %v1201_v38 = vadd.f32 %v2910_v41, %v1200_v49 }
 0x35b   : > { %2223 = vtanh.f32 %v1201_v38 }
 0x35c   : > { %2225 = vtanh.f32 %v1209_v32 }
 0x35d   : > { %2227 = vtanh.f32 %v1206_v34 }
 0x364   : > { %v2222_v37 = vpop.eup %2221 }
 0x365   : > { %v2022_v35 = vpop.f32.mrf.mxu1 }
 0x366   : > { %v1222_v54 = vadd.f32 %v2022_v35, %v2910_v41 }
 0x367   : > { %v1213_v39 = vpop.f32.mrf.mxu1 }
 0x368   : > { %v2224_v40 = vpop.eup %2223  ;;  %v1214_v43 = vadd.f32 %v2910_v41, %v1213_v39 }
 0x369   : > { %v2023_v44 = vpop.f32.mrf.mxu1  ;;  %v1276_v46 = vpack.c.bf16 %v2224_v40, %v2222_v37  ;;  %v2226_v50 = vpop.eup %2225 }
 0x36a   : > { %2229 = vtanh.f32 %v1214_v43  ;;  %v2228_v36 = vpop.eup %2227  ;;  %v1225_v51 = vadd.f32 %v2023_v44, %v2910_v41 }
 0x36b   : > { %v1216_v47 = vpop.f32.mrf.mxu1  ;;  %1425 = vmatmul.mubr.bf16.vlgmr.msra.gmra.mxu0 %v1276_v46  ;;  %v1277_v53 = vpack.c.bf16 %v2226_v50, %v2228_v36 }
 0x36c   : > { %v1217_v48 = vadd.f32 %v2910_v41, %v1216_v47  ;;  %1434 = vmatprep.mubr.bf16.mxu0 %v2381_v28 }
 0x36d   : > { %v2026_v57 = vpop.f32.mrf.mxu1 }
 0x36e   : > { %2231 = vtanh.f32 %v1217_v48  ;;  %v1238_v3 = vadd.f32 %v2026_v57, %v2910_v41 }
 0x36f   : > { %v1229_v2 = vpop.f32.mrf.mxu1  ;;  %2233 = vtanh.f32 %v1225_v51 }
 0x370   : > { %2235 = vtanh.f32 %v1222_v54  ;;  %v1230_v59 = vadd.f32 %v2910_v41, %v1229_v2 }
 0x371   : > { %v2027_v52 = vpop.f32.mrf.mxu1 }
 0x372   : > { %v1241_v0 = vadd.f32 %v2027_v52, %v2910_v41 }
 0x373   : > { %1435 = vmatmul.mubr.bf16.gmra.mxu0 %v1277_v53  ;;  %v1232_v56 = vpop.f32.mrf.mxu1 }
 0x374   : > { %1444 = vmatprep.mubr.bf16.mxu0 %v2381_v28  ;;  %v1233_v55 = vadd.f32 %v2910_v41, %v1232_v56 }
 0x375   : > { %v2030_v62 = vpop.f32.mrf.mxu1 }
 0x376   : > { %2237 = vtanh.f32 %v1233_v55  ;;  %v1254_v18 = vadd.f32 %v2030_v62, %v2910_v41 }
 0x377   : > { %v2230_v58 = vpop.eup %2229  ;;  %v1245_v63 = vpop.f32.mrf.mxu1  ;;  %2239 = vtanh.f32 %v1230_v59 }
 0x378   : > { %2241 = vtanh.f32 %v1241_v0  ;;  %v1246_v9 = vadd.f32 %v2910_v41, %v1245_v63 }
 0x379   : > { %v2031_v13 = vpop.f32.mrf.mxu1  ;;  %2243 = vtanh.f32 %v1238_v3 }
 0x37a   : > { %v1257_v8 = vadd.f32 %v2031_v13, %v2910_v41 }
 0x37b   : > { %v2232_v60 = vpop.eup %2231  ;;  %v1248_v5 = vpop.f32.mrf.mxu1 }
 0x37c   : > { %v1278_v61 = vpack.c.bf16 %v2232_v60, %v2230_v58  ;;  %v2234_v1 = vpop.eup %2233  ;;  %v1249_v6 = vadd.f32 %v2910_v41, %v1248_v5 }
 0x37d   : > { %v2236_v21 = vpop.eup %2235 }
 0x37e   : > { %1445 = vmatmul.mubr.bf16.gmra.mxu0 %v1278_v61  ;;  %v1279_v4 = vpack.c.bf16 %v2234_v1, %v2236_v21  ;;  %2245 = vtanh.f32 %v1249_v6 }
 0x37f   : > { %1454 = vmatprep.mubr.bf16.mxu0 %v2381_v28  ;;  %2247 = vtanh.f32 %v1246_v9 }
 0x380   : > { %2249 = vtanh.f32 %v1257_v8 }
 0x381   : > { %2251 = vtanh.f32 %v1254_v18 }
 0x383   : > { %v2238_v7 = vpop.eup %2237 }
 0x384   : > { %v2240_v10 = vpop.eup %2239 }
 0x385   : > { %v1280_v12 = vpack.c.bf16 %v2238_v7, %v2240_v10  ;;  %v2242_v14 = vpop.eup %2241 }
 0x386   : > { %1455 = vmatmul.mubr.bf16.gmra.mxu0 %v1279_v4  ;;  %v2244_v15 = vpop.eup %2243 }
 0x387   : > { %1464 = vmatprep.mubr.bf16.mxu0 %v2381_v28  ;;  %v1281_v16 = vpack.c.bf16 %v2242_v14, %v2244_v15 }
 0x38b   : > { %v2246_v30 = vpop.eup %2245 }
 0x38c   : > { %v2248_v42 = vpop.eup %2247 }
 0x38d   : > { %v1282_v26 = vpack.c.bf16 %v2246_v30, %v2248_v42  ;;  %v2250_v33 = vpop.eup %2249 }
 0x38e   : > { %1465 = vmatmul.mubr.bf16.gmra.mxu0 %v1280_v12  ;;  %v2252_v17 = vpop.eup %2251 }
 0x38f   : > { %1474 = vmatprep.mubr.bf16.mxu0 %v2381_v28  ;;  %v1283_v19 = vpack.c.bf16 %v2250_v33, %v2252_v17 }
 0x396   : > { %1475 = vmatmul.mubr.bf16.gmra.mxu0 %v1281_v16 }
 0x397   : > { %1484 = vmatprep.mubr.bf16.mxu0 %v2381_v28 }
 0x39e   : > { %1485 = vmatmul.mubr.bf16.gmra.mxu0 %v1282_v26 }
 0x39f   : > { %1494 = vmatprep.mubr.bf16.mxu0 %v2381_v28 }
 0x3a6   : > { %1495 = vmatmul.mubr.bf16.gmra.mxu0 %v1283_v19 }
 0x3a7   : > { %2294 = shalt.err (!%p2291_p0)
}
 0x3a8   : > { %s2295_s15 = scalar_lea.hbm %s2941_s27, 2048  ;;  %s2299_s14 = scalar_lea.hbm %s3094_s11, 4096 }
 0x3a9   : > { %p2296_p2 = scmp.ne.s32.totalorder %s2941_s27, %s2295_s15  ;;  %p2300_p3 = scmp.lt.s32.totalorder %s2941_s27, %s3094_s11 }
 0x3aa   : > { %p2301_p6 = scmp.lt.s32.totalorder %s2299_s14, %s2295_s15 }
 0x3ab   : > { %p2297_p9 = pnand %p2296_p2, %p3112_p13 }
 0x3ac   : > { %p2302_p11 = por %p2301_p6, %p2300_p3 }
 0x3ad   : > { %p2298_p1 = pneg %p2297_p9 }
 0x3af   : > { %p2303_p12 = pnand %p2302_p11, %p2298_p1 }
 0x3b1   : > { %2306 = shalt.err (!%p2303_p12)
}
 0x3b2   : > { %s2383_s24 = smov 128   ;;  %s2384_s25 = smov 8   ;;  %v1302_v20 = vlaneseq  ;;  %v1300_v25 = vld [vmem:[%s3092_s9] sm:$0x3] }
 0x3b3   : > { %2051 = dma.vmem_to_hbm [thread:$0]  (%p3112_p13), %s2944_s26, 2048, %s2941_s27, %s1623_s16, %s2383_s24, %s2383_s24, %s2384_s25  }
 0x3b4   : > { %v1303_v22 = vshrl.u32 %v1302_v20, 7  ;;  %s2983_s27 = scalar_lea.vmem [#allocation5], %s1779_s13  ;;  %s3113_s26 = sshll.u32 %s2467_s21, 11 }
 0x3b5   : > { %s1637_s13 = sshll.u32 %s2983_s27, 4  ;;  %s3036_s22 = scalar_lea.hbm %s3093_s10, %s3113_s26  ;;  %s3038_s13 = int_to_ptr.vmem [resolvable:$true] %s1637_s13 }
 0x3b6   : > { %v1304_v23 = vsub.s32 0, %v1303_v22  ;;  %v1308_v24 = vsub.s32 1, %v1303_v22  ;;  %s1618_s28 = scalar_lea.sflag [#allocation4], %s2543_s30  ;;  %s2307_s14 = scalar_lea.vmem %s3038_s13, 2048 }
 0x3b7   : > { %p2308_p4 = scmp.ne.s32.totalorder %s3038_s13, %s2307_s14  ;;  %s2385_s19 = smov [#allocation5]  }
 0x3b8   : > { %v2975_v27 = vrot.slane %v1300_v25, %v1304_v23  ;;  %v2977_v28 = vrot.slane %v1300_v25, %v1308_v24  ;;  %s2311_s23 = sshll.u32 %s2385_s19, 4  ;;  %s2312_s23 = int_to_ptr.vmem [resolvable:$false] %s2311_s23 }
 0x3b9   : > { %p2309_p5 = pnand %p2308_p4, %p3112_p13  ;;  %s2313_s21 = scalar_lea.vmem %s2312_s23, 4096 }
 0x3ba   : > { %p2314_p8 = scmp.lt.s32.totalorder %s3038_s13, %s2312_s23  ;;  %p2315_p10 = scmp.lt.s32.totalorder %s2313_s21, %s2307_s14 }
 0x3bb   : > { %p2310_p7 = pneg %p2309_p5 }
 0x3bc   : > { %p2316_p0 = por %p2315_p10, %p2314_p8 }
 0x3be   : > { %p2317_p2 = pnand %p2316_p0, %p2310_p7 }
 0x42b   : > { %v1426_v45 = vpop.f32.mrf.mxu0 }
 0x42c   : > { %v1427_v41 = vadd.f32 %v1426_v45, %v2975_v27 }
 0x42d   : > { %v1428_v29 = vpop.f32.mrf.mxu0 }
 0x42e   : > { %v1429_v31 = vadd.f32 %v1428_v29, %v2977_v28 }
 0x42f   : > { %v1430_v11 = vpop.f32.mrf.mxu0 }
 0x430   : > { %v1865_v49 = vpack.c.bf16 %v1429_v31, %v1427_v41  ;;  %v1431_v32 = vadd.f32 %v1430_v11, %v2975_v27 }
 0x431   : > { %v1432_v38 = vpop.f32.mrf.mxu0 }
 0x432   : > { %1601 = vst [vmem:[%s2983_s27] sm:$0xff] %v1865_v49  ;;  %v1433_v34 = vadd.f32 %v1432_v38, %v2977_v28 }
 0x433   : > { %v1436_v35 = vpop.f32.mrf.mxu0 }
 0x434   : > { %v1866_v37 = vpack.c.bf16 %v1433_v34, %v1431_v32  ;;  %v1437_v40 = vadd.f32 %v1436_v35, %v2975_v27 }
 0x435   : > { %v1438_v39 = vpop.f32.mrf.mxu0 }
 0x436   : > { %1602 = vst [vmem:[%s2983_s27 + $0x8] sm:$0xff] %v1866_v37  ;;  %v1439_v43 = vadd.f32 %v1438_v39, %v2977_v28 }
 0x437   : > { %v1440_v44 = vpop.f32.mrf.mxu0 }
 0x438   : > { %v1867_v46 = vpack.c.bf16 %v1439_v43, %v1437_v40  ;;  %v1441_v48 = vadd.f32 %v1440_v44, %v2975_v27 }
 0x439   : > { %v1442_v47 = vpop.f32.mrf.mxu0 }
 0x43a   : > { %1603 = vst [vmem:[%s2983_s27 + $0x10] sm:$0xff] %v1867_v46  ;;  %v1443_v57 = vadd.f32 %v1442_v47, %v2977_v28 }
 0x43c   : > { %v1868_v50 = vpack.c.bf16 %v1443_v57, %v1441_v48 }
 0x43e   : > { %1604 = vst [vmem:[%s2983_s27 + $0x18] sm:$0xff] %v1868_v50  ;;  %v1446_v2 = vpop.f32.mrf.mxu0 }
 0x43f   : > { %v1447_v51 = vadd.f32 %v1446_v2, %v2975_v27 }
 0x440   : > { %v1448_v36 = vpop.f32.mrf.mxu0 }
 0x441   : > { %v1449_v52 = vadd.f32 %v1448_v36, %v2977_v28 }
 0x442   : > { %v1450_v53 = vpop.f32.mrf.mxu0 }
 0x443   : > { %v1869_v54 = vpack.c.bf16 %v1449_v52, %v1447_v51  ;;  %v1451_v55 = vadd.f32 %v1450_v53, %v2975_v27 }
 0x444   : > { %v1452_v56 = vpop.f32.mrf.mxu0 }
 0x445   : > { %1605 = vst [vmem:[%s2983_s27 + $0x20] sm:$0xff] %v1869_v54  ;;  %v1453_v62 = vadd.f32 %v1452_v56, %v2977_v28 }
 0x446   : > { %v1456_v58 = vpop.f32.mrf.mxu0 }
 0x447   : > { %v1870_v59 = vpack.c.bf16 %v1453_v62, %v1451_v55  ;;  %v1457_v61 = vadd.f32 %v1456_v58, %v2975_v27 }
 0x448   : > { %v1458_v60 = vpop.f32.mrf.mxu0 }
 0x449   : > { %1606 = vst [vmem:[%s2983_s27 + $0x28] sm:$0xff] %v1870_v59  ;;  %v1459_v63 = vadd.f32 %v1458_v60, %v2977_v28 }
 0x44a   : > { %v1460_v0 = vpop.f32.mrf.mxu0 }
 0x44b   : > { %v1871_v1 = vpack.c.bf16 %v1459_v63, %v1457_v61  ;;  %v1461_v3 = vadd.f32 %v1460_v0, %v2975_v27 }
 0x44c   : > { %v1462_v13 = vpop.f32.mrf.mxu0 }
 0x44d   : > { %1607 = vst [vmem:[%s2983_s27 + $0x30] sm:$0xff] %v1871_v1  ;;  %v1463_v21 = vadd.f32 %v1462_v13, %v2977_v28 }
 0x44e   : > { %v1466_v4 = vpop.f32.mrf.mxu0 }
 0x44f   : > { %v1872_v5 = vpack.c.bf16 %v1463_v21, %v1461_v3  ;;  %v1467_v7 = vadd.f32 %v1466_v4, %v2975_v27 }
 0x450   : > { %v1468_v6 = vpop.f32.mrf.mxu0 }
 0x451   : > { %1608 = vst [vmem:[%s2983_s27 + $0x38] sm:$0xff] %v1872_v5  ;;  %v1469_v9 = vadd.f32 %v1468_v6, %v2977_v28 }
 0x452   : > { %v1470_v10 = vpop.f32.mrf.mxu0 }
 0x453   : > { %v1873_v12 = vpack.c.bf16 %v1469_v9, %v1467_v7  ;;  %v1471_v14 = vadd.f32 %v1470_v10, %v2975_v27 }
 0x454   : > { %v1472_v8 = vpop.f32.mrf.mxu0 }
 0x455   : > { %1609 = vst [vmem:[%s2983_s27 + $0x40] sm:$0xff] %v1873_v12  ;;  %v1473_v18 = vadd.f32 %v1472_v8, %v2977_v28 }
 0x456   : > { %v1476_v15 = vpop.f32.mrf.mxu0 }
 0x457   : > { %v1874_v16 = vpack.c.bf16 %v1473_v18, %v1471_v14  ;;  %v1477_v42 = vadd.f32 %v1476_v15, %v2975_v27 }
 0x458   : > { %v1478_v30 = vpop.f32.mrf.mxu0 }
 0x459   : > { %1610 = vst [vmem:[%s2983_s27 + $0x48] sm:$0xff] %v1874_v16  ;;  %v1479_v26 = vadd.f32 %v1478_v30, %v2977_v28 }
 0x45a   : > { %v1480_v33 = vpop.f32.mrf.mxu0 }
 0x45b   : > { %v1875_v17 = vpack.c.bf16 %v1479_v26, %v1477_v42  ;;  %v1481_v20 = vadd.f32 %v1480_v33, %v2975_v27 }
 0x45c   : > { %v1482_v19 = vpop.f32.mrf.mxu0 }
 0x45d   : > { %1611 = vst [vmem:[%s2983_s27 + $0x50] sm:$0xff] %v1875_v17  ;;  %v1483_v22 = vadd.f32 %v1482_v19, %v2977_v28 }
 0x45e   : > { %v1486_v23 = vpop.f32.mrf.mxu0 }
 0x45f   : > { %v1876_v24 = vpack.c.bf16 %v1483_v22, %v1481_v20  ;;  %v1487_v45 = vadd.f32 %v1486_v23, %v2975_v27 }
 0x460   : > { %v1488_v25 = vpop.f32.mrf.mxu0 }
 0x461   : > { %1612 = vst [vmem:[%s2983_s27 + $0x58] sm:$0xff] %v1876_v24  ;;  %v1489_v29 = vadd.f32 %v1488_v25, %v2977_v28 }
 0x462   : > { %v1490_v41 = vpop.f32.mrf.mxu0 }
 0x463   : > { %v1877_v31 = vpack.c.bf16 %v1489_v29, %v1487_v45  ;;  %v1491_v49 = vadd.f32 %v1490_v41, %v2975_v27 }
 0x464   : > { %v1492_v11 = vpop.f32.mrf.mxu0 }
 0x465   : > { %1613 = vst [vmem:[%s2983_s27 + $0x60] sm:$0xff] %v1877_v31  ;;  %v1493_v38 = vadd.f32 %v1492_v11, %v2977_v28 }
 0x466   : > { %v1496_v32 = vpop.f32.mrf.mxu0 }
 0x467   : > { %v1878_v34 = vpack.c.bf16 %v1493_v38, %v1491_v49  ;;  %v1497_v37 = vadd.f32 %v1496_v32, %v2975_v27 }
 0x468   : > { %v1498_v35 = vpop.f32.mrf.mxu0 }
 0x469   : > { %1614 = vst [vmem:[%s2983_s27 + $0x68] sm:$0xff] %v1878_v34  ;;  %v1499_v39 = vadd.f32 %v1498_v35, %v2977_v28 }
 0x46a   : > { %v1500_v40 = vpop.f32.mrf.mxu0 }
 0x46b   : > { %v1879_v43 = vpack.c.bf16 %v1499_v39, %v1497_v37  ;;  %v1501_v46 = vadd.f32 %v1500_v40, %v2975_v27 }
 0x46c   : > { %v1502_v44 = vpop.f32.mrf.mxu0 }
 0x46d   : > { %1615 = vst [vmem:[%s2983_s27 + $0x70] sm:$0xff] %v1879_v43  ;;  %v1503_v47 = vadd.f32 %v1502_v44, %v2977_v28 }
 0x46f   : > { %v1880_v48 = vpack.c.bf16 %v1503_v47, %v1501_v46 }
 0x471   : > { %1616 = vst [vmem:[%s2983_s27 + $0x78] sm:$0xff] %v1880_v48 }
 0x472   : > { %2320 = shalt.err (!%p2317_p2)
}
 0x473   : > { %s2321_s12 = scalar_lea.hbm %s3036_s22, 2048  ;;  %s2325_s26 = scalar_lea.hbm %s3093_s10, 4096 }
 0x474   : > { %p2322_p9 = scmp.ne.s32.totalorder %s3036_s22, %s2321_s12  ;;  %p2326_p6 = scmp.lt.s32.totalorder %s3036_s22, %s3093_s10 }
 0x475   : > { %p2327_p11 = scmp.lt.s32.totalorder %s2325_s26, %s2321_s12 }
 0x476   : > { %p2323_p1 = pnand %p2322_p9, %p3112_p13 }
 0x477   : > { %p2328_p12 = por %p2327_p11, %p2326_p6 }
 0x478   : > { %p2324_p3 = pneg %p2323_p1 }
 0x47a   : > { %p2329_p4 = pnand %p2328_p12, %p2324_p3 }
 0x47c   : > { %2332 = shalt.err (!%p2329_p4)
}
 0x47d   : > { %2050 = dma.vmem_to_hbm [thread:$0]  (%p3112_p13), %s3038_s13, 2048, %s3036_s22, %s1618_s28, %s2383_s24, %s2383_s24, %s2384_s25  }
 0x47e PF: > { %s3114_s14 = sld [smem:[#allocation14_spill]]  ;;  %s1668_s19 = sand.u32 1, %s2363_s17  }
 0x47f   : > { %p3116_p7 = scmp.ge.s32.totalorder %s2375_s20, 2  ;;  %s1669_s23 = scalar_lea.sflag [#allocation4], %s1668_s19 }
 0x484   : > { %p3115_p5 = scmp.ne.s32.totalorder %s3114_s14, 0 }
 0x486   : > { %p2059_p8 = pnand %p3116_p7, %p3115_p5 }
 0x488   : > { %p2060_p10 = pneg %p2059_p8 }
 0x48a   : > { %2354 = dma.done.wait (%p2060_p10), %s1669_s23, 2048  }
 0x48b   : > { %2356 = vsyncadd (%p2060_p10), %s1669_s23, 4294965248  ;;  %s1678_s21 = scalar_lea.sflag [#allocation7], %s1668_s19 }
 0x48c   : > { %2358 = dma.done.wait (%p2060_p10), %s1678_s21, 2048  }
 0x48d   : > { %2360 = vsyncadd (%p2060_p10), %s1678_s21, 4294965248  ;;  %s3117_s20 = sld [smem:[#allocation12_spill]]  ;;  %s3120_s17 = smov %s2367_s18 }
 0x48e   : > { %s3118_s29 = sld [smem:[#allocation11_spill]] }
 0x48f   : > { %s3119_s19 = sld [smem:[#allocation13_spill]] }
 0x493   : > { %p28_p13 = scmp.ge.s32.totalorder %s3117_s20, 4  }
 0x494   : > { %s3121_s18 = smov %s3118_s29 }
 0x495   :  { %30 = sbr.rel (!%p28_p13) target bundleno = 7 (0x7), region = 125 }
 0x49a   :  { %1683 = vsyncpa [#allocation3], 1 }
 0x49b   :  { %1685 = vsyncpa [#allocation3 + $0x1], 1 }
 0x49c   :  { %1686 = vsyncpa [#allocation4], 1 }
 0x49d   :  { %1688 = vsyncpa [#allocation4 + $0x1], 1 }
 0x49e   :  { %1689 = vsyncpa [#allocation7], 1 }
 0x49f   :  { %1691 = vsyncpa [#allocation7 + $0x1], 1 }

</bundles_post_ra>
